<compile_context>
chip_gen: v5e
topology: v5e:2x2
jax: 0.10.0
libtpu: 0.0.40
codegen_flags: <defaults>
</compile_context>

<pallas_src>
import functools

import numpy as np
import jax
import jax.numpy as jnp
from jax import lax
from jax.experimental import pallas as pl
from jax.experimental.pallas import tpu as pltpu

BN_EPS = 1e-5
ROW0 = 8          # sublane offset of the interior rows inside the padded staging scratch


# ----------------- P4M (D4) weight expansion: parameter-setup glue -----------------

def _d4_matrices():
    mats = []
    for m in range(2):
        for r in range(4):
            c = int(round(np.cos(np.pi / 2 * r)))
            s = int(round(np.sin(np.pi / 2 * r)))
            rot = np.array([[c, -s], [s, c]], dtype=np.int64)
            mir = np.array([[1, 0], [0, -1]], dtype=np.int64) if m else np.eye(2, dtype=np.int64)
            mats.append(mir @ rot)
    return mats


def _p4m_transform_indices(ksize):
    mats = _d4_matrices()
    n = 8
    c = (ksize - 1) // 2
    perm = np.zeros((n, n), dtype=np.int64)
    spat = np.zeros((n, ksize, ksize, 2), dtype=np.int64)
    for so in range(n):
        ginv = mats[so].T
        for si in range(n):
            h = ginv @ mats[si]
            perm[so, si] = next(t for t in range(n) if np.array_equal(mats[t], h))
        for i in range(ksize):
            for j in range(ksize):
                v = ginv @ np.array([i - c, j - c], dtype=np.int64)
                spat[so, i, j] = v + c
    return perm, spat


def p4m_expand_weight(w_base):
    """(Cout, Cin, 8, k, k) base weight -> (Cout*8, Cin*8, k, k) dense conv2d weight (OIHW)."""
    w = np.asarray(w_base)
    cout, cin, n, k, _ = w.shape
    perm, spat = _p4m_transform_indices(k)
    tw = np.zeros((cout, n, cin, n, k, k), dtype=w.dtype)
    for so in range(n):
        ti = spat[so, :, :, 0]
        tj = spat[so, :, :, 1]
        for si in range(n):
            src = w[:, :, perm[so, si]]
            tw[:, so, :, si] = src[:, :, ti, tj]
    return tw.reshape(cout * n, cin * n, k, k)


# ----------------- BN folding + K-merged grouped-weight construction ----------------

def fold_bn_into_conv(w_hwio, bn):
    """Fold eval-mode BatchNorm into the conv: returns (scaled weight, per-channel bias)."""
    gamma, beta, mean, var = bn[0], bn[1], bn[2], bn[3]
    scale = gamma * lax.rsqrt(var + BN_EPS)
    w_folded = w_hwio * scale[None, None, None, :]
    bias = beta - mean * scale
    return w_folded, bias


def build_grouped_weight(w_folded, group, dtype=jnp.bfloat16):
    """(3, 3, Cin, Cout) HWIO -> (3*(group+4)*Cin, group*Cout) bf16 K-merged banded weight.

    * The three height taps (dy) are stacked along K, so each conv is ONE MXU matmul.
    * Each per-tap band is padded from (group+2)*Cin to (group+4)*Cin rows (two extra zero
      pixels) so the kernel's lhs window per pixel-group is exactly 256 lanes = 2 aligned
      vregs: the lhs build is pure vreg moves instead of masked 192-lane slices.
    * Column block j (output pixel j of the group) carries w[dy, dx, ci, o] at row
      (j + dx)*Cin + ci, i.e. the matmul result is already pixel-major / channel-minor.
    """
    kh, kw, cin, cout = w_folded.shape
    slabs = []
    for dy in range(kh):
        w_dy = w_folded[dy].reshape(kw * cin, cout)          # rows ordered (dx, cin)
        cols = [jnp.pad(w_dy, ((j * cin, (group + 1 - j) * cin), (0, 0)))
                for j in range(group)]
        slabs.append(jnp.concatenate(cols, axis=1))          # ((group+4)*Cin, group*Cout)
    return jnp.concatenate(slabs, axis=0).astype(dtype)      # (3*(group+4)*Cin, group*Cout)


# ------------------------------- Pallas kernel --------------------------------------

def grou_basic_block_kernel(x_ref, wg1_ref, wg2_ref, b1_ref, b2_ref, out_ref, pad_ref):
    # x_ref  : (bb, H, W*C)        bf16 lane-dense input rows (sole activation input)
    # wg*_ref: (3*KG, G*C)         bf16 K-merged banded conv weights (BN folded), resident
    # b*_ref : (1, W*C)            f32 folded BN bias tiled over width, resident
    # out_ref: (bb, H, W*C)        f32 lane-dense output
    # pad_ref: (bb, H+16, (W+4)*C) bf16 scratch; rows [ROW0, ROW0+H) hold the interior,
    #          rows ROW0-1 / ROW0+H and the side column strips form the zero halo.
    bb, H, WC = out_ref.shape
    _, _, WpC = pad_ref.shape
    GC = wg1_ref.shape[1]            # G*C: 128 output lanes (G pixels x C channels) per group
    KG = wg1_ref.shape[0] // 3       # (G+4)*C per-tap window width (= 256 lanes, 2 vregs)
    ng = WC // GC                    # pixel groups per row
    C = (WpC - WC) // 4              # channels (left halo = C lanes, right halo = 3*C lanes)
    cdt = pad_ref.dtype              # bf16 matmul-operand / staging dtype

    # ---- zero the halo ring once per grid step; it stays valid for both convs because
    #      only the interior is overwritten between conv1 and conv2 ----
    pad_ref[:, ROW0 - 1:ROW0, :] = jnp.zeros((bb, 1, WpC), cdt)
    pad_ref[:, ROW0 + H:ROW0 + H + 1, :] = jnp.zeros((bb, 1, WpC), cdt)
    pad_ref[:, ROW0:ROW0 + H, 0:C] = jnp.zeros((bb, H, C), cdt)
    pad_ref[:, ROW0:ROW0 + H, C + WC:WpC] = jnp.zeros((bb, H, WpC - WC - C), cdt)

    def conv3x3(wg_ref, b_ref):
        # Single MXU matmul per conv: lhs rows are (image, pixel-group, y); the K axis is
        # three dy taps x a 256-lane, 128-aligned width window (matching the K-merged
        # banded weight), so window extraction and the lane-concat are pure vreg moves.
        blocks = []
        for i in range(bb):
            for g in range(ng):
                taps = [pad_ref[i, ROW0 - 1 + dy:ROW0 - 1 + dy + H, g * GC:g * GC + KG]
                        for dy in range(3)]
                blocks.append(jnp.concatenate(taps, axis=-1))            # (H, 3*KG) bf16
        lhs = jnp.concatenate(blocks, axis=0)                            # (bb*ng*H, 3*KG)
        acc = jnp.dot(lhs, wg_ref[...], preferred_element_type=jnp.float32)
        # acc rows are ordered (image, group, y); regroup into lane-dense (bb, H, W*C).
        rows = [jnp.concatenate([acc[(i * ng + g) * H:(i * ng + g + 1) * H, :]
                                 for g in range(ng)], axis=-1)
                for i in range(bb)]
        return jnp.stack(rows, axis=0) + b_ref[...]                      # (bb, H, W*C) f32

    x_rows = x_ref[...]                                                  # bf16

    # ---- conv1 + folded BN1 + ReLU (stage the interior; halo already zero) ----
    pad_ref[:, ROW0:ROW0 + H, C:C + WC] = x_rows
    h1 = jnp.maximum(conv3x3(wg1_ref, b1_ref), 0.0)

    # ---- conv2 + folded BN2 (re-stage only the interior with bf16 h1) ----
    pad_ref[:, ROW0:ROW0 + H, C:C + WC] = h1.astype(cdt)
    c2 = conv3x3(wg2_ref, b2_ref)

    # ---- identity shortcut + final ReLU; single unmasked lane-dense f32 store ----
    out_ref[...] = jnp.maximum(c2 + x_rows.astype(jnp.float32), 0.0).astype(out_ref.dtype)


@functools.partial(jax.jit, static_argnames=("images_per_step",))
def grou_basic_block(x_nchw, w1_hwio, w2_hwio, bn1, bn2, images_per_step=1):
    """x_nchw: (N, planes*8, H, W) f32; weights already P4M-expanded, HWIO layout.

    images_per_step: images fused into one grid step (raises the matmul M dimension).
      * v5e / v6e: set to N (e.g. 2 -> M = 128 rows, one grid step, matches/fills the MXU).
      * v7x: keep >= 2 grid steps so both TensorCores get work ('parallel' megacore axis).
    """
    n, c, h, w = x_nchw.shape
    assert 128 % c == 0, "channel count must divide 128 for the grouped-matmul layout"
    group = 128 // c                 # output pixels per 128-lane group
    assert w % group == 0, "width must be a multiple of the pixel group size"
    assert w1_hwio.shape[2] == w1_hwio.shape[3] == c, "identity shortcut requires cin == cout"
    bb = min(images_per_step, n)
    assert n % bb == 0, "batch must be divisible by images_per_step"

    # ---- parameter prep (setup glue): fold eval BN, build bf16 K-merged banded weights ----
    w1f, b1 = fold_bn_into_conv(w1_hwio, bn1)
    w2f, b2 = fold_bn_into_conv(w2_hwio, bn2)
    wg1 = build_grouped_weight(w1f, group)           # (3*(G+4)*C, G*C) bf16
    wg2 = build_grouped_weight(w2f, group)
    b1_row = jnp.tile(b1, w)[None, :]                # (1, W*C) f32
    b2_row = jnp.tile(b2, w)[None, :]

    # ---- sole activation input: lane-dense bf16 rows (no duplicated padded HBM copy) ----
    x_rows = jnp.transpose(x_nchw, (0, 2, 3, 1)).reshape(n, h, w * c).astype(jnp.bfloat16)

    kg3, gc = wg1.shape
    wc = w * c
    wpc = wc + (kg3 // 3 - gc)       # (W+4)*C: 1 halo pixel left, 1 halo + 2 align pixels right

    out_rows = pl.pallas_call(
        grou_basic_block_kernel,
        out_shape=jax.ShapeDtypeStruct((n, h, wc), jnp.float32),
        grid_spec=pltpu.PrefetchScalarGridSpec(
            num_scalar_prefetch=0,
            grid=(n // bb,),
            in_specs=[
                pl.BlockSpec((bb, h, wc), lambda b: (b, 0, 0)),   # bf16 activations
                pl.BlockSpec((kg3, gc), lambda b: (0, 0)),        # wg1 (resident)
                pl.BlockSpec((kg3, gc), lambda b: (0, 0)),        # wg2 (resident)
                pl.BlockSpec((1, wc), lambda b: (0, 0)),          # bias1 row (resident)
                pl.BlockSpec((1, wc), lambda b: (0, 0)),          # bias2 row (resident)
            ],
            out_specs=pl.BlockSpec((bb, h, wc), lambda b: (b, 0, 0)),
            scratch_shapes=[pltpu.VMEM((bb, h + 16, wpc), jnp.bfloat16)],
        ),
        compiler_params=pltpu.CompilerParams(
            dimension_semantics=("parallel",)),
    )(x_rows, wg1, wg2, b1_row, b2_row)

    out_nhwc = out_rows.reshape(n, h, w, c)
    return jnp.transpose(out_nhwc, (0, 3, 1, 2))                          # NHWC -> NCHW


# ------------------------------- references (plain JAX) ------------------------------

def reference(x_nchw, w1_hwio, w2_hwio, bn1, bn2, match_kernel_numerics=False):
    """match_kernel_numerics=False: pure-f32 module forward (conv -> BN -> relu, residual).
    match_kernel_numerics=True : same math but with BN folded and the conv operands rounded
    to bf16 exactly where the kernel rounds, so the comparison isolates layout correctness."""
    def conv(x, wgt):
        return lax.conv_general_dilated(
            x, wgt, window_strides=(1, 1), padding="SAME",
            dimension_numbers=("NHWC", "HWIO", "NHWC"),
            precision=lax.Precision.HIGHEST)

    x = jnp.transpose(x_nchw, (0, 2, 3, 1))
    if match_kernel_numerics:
        q = lambda a: a.astype(jnp.bfloat16).astype(jnp.float32)
        w1f, b1 = fold_bn_into_conv(w1_hwio, bn1)
        w2f, b2 = fold_bn_into_conv(w2_hwio, bn2)
        xq = q(x)
        h1 = q(jnp.maximum(conv(xq, q(w1f)) + b1, 0.0))
        out = jnp.maximum(conv(h1, q(w2f)) + b2 + xq, 0.0)
    else:
        def bn(z, p):
            gamma, beta, mean, var = p[0], p[1], p[2], p[3]
            return (z - mean) * lax.rsqrt(var + BN_EPS) * gamma + beta
        h1 = jnp.maximum(bn(conv(x, w1_hwio), bn1), 0.0)
        out = jnp.maximum(bn(conv(h1, w2_hwio), bn2) + x, 0.0)
    return jnp.transpose(out, (0, 3, 1, 2))


# ----------------------------------- main --------------------------------------------

if __name__ == "__main__":
    in_planes = planes = 4          # forward only supports in_planes == planes, stride == 1
    C = planes * 8                  # 32 channels after flattening the P4M group axis
    N, H, W = 2, 16, 16

    key = jax.random.PRNGKey(0)
    ks = jax.random.split(key, 12)

    x = jax.random.normal(ks[0], (N, C, H, W), jnp.float32)

    # P4MConvP4M base weights: (out_channels, in_channels, 8, 3, 3), bias=False
    w1_base = jax.random.normal(ks[1], (planes, in_planes, 8, 3, 3), jnp.float32) / np.sqrt(in_planes * 8 * 9)
    w2_base = jax.random.normal(ks[2], (planes, planes, 8, 3, 3), jnp.float32) / np.sqrt(planes * 8 * 9)

    def make_bn(kg, kb, km, kv):
        gamma = jax.random.uniform(kg, (C,), jnp.float32, 0.5, 1.5)
        beta = 0.1 * jax.random.normal(kb, (C,), jnp.float32)
        mean = 0.1 * jax.random.normal(km, (C,), jnp.float32)
        var = jax.random.uniform(kv, (C,), jnp.float32, 0.5, 1.5)
        return jnp.stack([gamma, beta, mean, var], axis=0)       # (4, C)

    bn1 = make_bn(ks[3], ks[4], ks[5], ks[6])
    bn2 = make_bn(ks[7], ks[8], ks[9], ks[10])

    # expand P4M base weights into dense conv2d weights; OIHW -> HWIO for the NHWC kernel
    w1_hwio = jnp.asarray(p4m_expand_weight(np.asarray(w1_base)).transpose(2, 3, 1, 0))
    w2_hwio = jnp.asarray(p4m_expand_weight(np.asarray(w2_base)).transpose(2, 3, 1, 0))

    ref_bf16 = jax.block_until_ready(
        reference(x, w1_hwio, w2_hwio, bn1, bn2, match_kernel_numerics=True))
    ref_f32 = jax.block_until_ready(
        reference(x, w1_hwio, w2_hwio, bn1, bn2, match_kernel_numerics=False))

    # bb=1: two 'parallel' grid steps (v7x megacore split).
    # bb=2: one grid step, matmul M = 128 (fills v5e's MXU / better fill on v6e's 256-wide MXU).
    for bb in (1, 2):
        out = jax.block_until_ready(
            grou_basic_block(x, w1_hwio, w2_hwio, bn1, bn2, images_per_step=bb))
        # tight check vs a reference that mirrors the kernel's bf16 operand rounding
        np.testing.assert_allclose(np.asarray(out), np.asarray(ref_bf16), rtol=5e-3, atol=5e-3)
        # semantic sanity check vs the pure-f32 module forward (tolerance = bf16-operand noise)
        np.testing.assert_allclose(np.asarray(out), np.asarray(ref_f32), rtol=1e-1, atol=1e-1)

    print("KERNEL_OK")
</pallas_src>

<mosaic_0001>
module attributes {stable_mosaic.version = 11 : i64} {
  func.func @grou_basic_block_kernel(%arg0: i32, %arg1: memref<1x16x512xbf16, #tpu.memory_space<vmem>>, %arg2: memref<768x128xbf16, #tpu.memory_space<vmem>>, %arg3: memref<768x128xbf16, #tpu.memory_space<vmem>>, %arg4: memref<1x512xf32, #tpu.memory_space<vmem>>, %arg5: memref<1x512xf32, #tpu.memory_space<vmem>>, %arg6: memref<1x16x512xf32, #tpu.memory_space<vmem>>, %arg7: memref<1x32x640xbf16, #tpu.memory_space<vmem>>) attributes {dimension_semantics = [#tpu.dimension_semantics<parallel>], iteration_bounds = array<i64: 2>, scalar_prefetch = 0 : i64, scratch_operands = 1 : i64, tpu.core_type = #tpu.core_type<tc>, window_params = [{transform_indices = @transform_0, window_bounds = array<i64: 1, 16, 512>}, {pipeline_mode = #tpu.pipeline_mode<synchronous>, transform_indices = @transform_1, window_bounds = array<i64: 768, 128>}, {pipeline_mode = #tpu.pipeline_mode<synchronous>, transform_indices = @transform_2, window_bounds = array<i64: 768, 128>}, {pipeline_mode = #tpu.pipeline_mode<synchronous>, transform_indices = @transform_3, window_bounds = array<i64: 1, 512>}, {pipeline_mode = #tpu.pipeline_mode<synchronous>, transform_indices = @transform_4, window_bounds = array<i64: 1, 512>}, {transform_indices = @transform_5, window_bounds = array<i64: 1, 16, 512>}]} {
    %cst = arith.constant 0.000000e+00 : bf16
    %0 = vector.broadcast %cst : bf16 to vector<1x1x640xbf16>
    %c0 = arith.constant 0 : index
    %c7 = arith.constant 7 : index
    %c0_0 = arith.constant 0 : index
    %1 = vector.load %arg7[%c0, %c7, %c0_0] : memref<1x32x640xbf16, #tpu.memory_space<vmem>>, vector<1x1x640xbf16>
    tpu.vector_store %arg7[%c0, %c7, %c0_0], %0 {strides = array<i32>} : memref<1x32x640xbf16, #tpu.memory_space<vmem>>, vector<1x1x640xbf16>,
    %cst_1 = arith.constant 0.000000e+00 : bf16
    %2 = vector.broadcast %cst_1 : bf16 to vector<1x1x640xbf16>
    %c0_2 = arith.constant 0 : index
    %c24 = arith.constant 24 : index
    %c0_3 = arith.constant 0 : index
    %3 = vector.load %arg7[%c0_2, %c24, %c0_3] : memref<1x32x640xbf16, #tpu.memory_space<vmem>>, vector<1x1x640xbf16>
    tpu.vector_store %arg7[%c0_2, %c24, %c0_3], %2 {strides = array<i32>} : memref<1x32x640xbf16, #tpu.memory_space<vmem>>, vector<1x1x640xbf16>,
    %cst_4 = arith.constant 0.000000e+00 : bf16
    %4 = vector.broadcast %cst_4 : bf16 to vector<1x16x32xbf16>
    %c0_5 = arith.constant 0 : index
    %c8 = arith.constant 8 : index
    %c0_6 = arith.constant 0 : index
    %5 = vector.load %arg7[%c0_5, %c8, %c0_6] : memref<1x32x640xbf16, #tpu.memory_space<vmem>>, vector<1x16x32xbf16>
    tpu.vector_store %arg7[%c0_5, %c8, %c0_6], %4 {strides = array<i32>} : memref<1x32x640xbf16, #tpu.memory_space<vmem>>, vector<1x16x32xbf16>,
    %cst_7 = arith.constant 0.000000e+00 : bf16
    %6 = vector.broadcast %cst_7 : bf16 to vector<1x16x96xbf16>
    %c0_8 = arith.constant 0 : index
    %c8_9 = arith.constant 8 : index
    %c544 = arith.constant 544 : index
    %7 = vector.load %arg7[%c0_8, %c8_9, %c544] : memref<1x32x640xbf16, #tpu.memory_space<vmem>>, vector<1x16x96xbf16>
    tpu.vector_store %arg7[%c0_8, %c8_9, %c544], %6 {strides = array<i32>} : memref<1x32x640xbf16, #tpu.memory_space<vmem>>, vector<1x16x96xbf16>,
    %c0_10 = arith.constant 0 : index
    %c0_11 = arith.constant 0 : index
    %c0_12 = arith.constant 0 : index
    %8 = vector.load %arg1[%c0_10, %c0_11, %c0_12] : memref<1x16x512xbf16, #tpu.memory_space<vmem>>, vector<1x16x512xbf16>
    %c0_13 = arith.constant 0 : index
    %c8_14 = arith.constant 8 : index
    %c32 = arith.constant 32 : index
    %9 = vector.load %arg7[%c0_13, %c8_14, %c32] : memref<1x32x640xbf16, #tpu.memory_space<vmem>>, vector<1x16x512xbf16>
    tpu.vector_store %arg7[%c0_13, %c8_14, %c32], %8 {strides = array<i32>} : memref<1x32x640xbf16, #tpu.memory_space<vmem>>, vector<1x16x512xbf16>,
    %c0_15 = arith.constant 0 : index
    %c7_16 = arith.constant 7 : index
    %c0_17 = arith.constant 0 : index
    %10 = vector.load %arg7[%c0_15, %c7_16, %c0_17] : memref<1x32x640xbf16, #tpu.memory_space<vmem>>, vector<1x16x256xbf16>
    %11 = vector.shape_cast %10 : vector<1x16x256xbf16> to vector<16x256xbf16>
    %c0_18 = arith.constant 0 : index
    %c8_19 = arith.constant 8 : index
    %c0_20 = arith.constant 0 : index
    %12 = vector.load %arg7[%c0_18, %c8_19, %c0_20] : memref<1x32x640xbf16, #tpu.memory_space<vmem>>, vector<1x16x256xbf16>
    %13 = vector.shape_cast %12 : vector<1x16x256xbf16> to vector<16x256xbf16>
    %c0_21 = arith.constant 0 : index
    %c9 = arith.constant 9 : index
    %c0_22 = arith.constant 0 : index
    %14 = vector.load %arg7[%c0_21, %c9, %c0_22] : memref<1x32x640xbf16, #tpu.memory_space<vmem>>, vector<1x16x256xbf16>
    %15 = vector.shape_cast %14 : vector<1x16x256xbf16> to vector<16x256xbf16>
    %16 = tpu.concatenate %11, %13, %15 in 1 : vector<16x256xbf16>, vector<16x256xbf16>, vector<16x256xbf16> -> vector<16x768xbf16>
    %c0_23 = arith.constant 0 : index
    %c7_24 = arith.constant 7 : index
    %c128 = arith.constant 128 : index
    %17 = vector.load %arg7[%c0_23, %c7_24, %c128] : memref<1x32x640xbf16, #tpu.memory_space<vmem>>, vector<1x16x256xbf16>
    %18 = vector.shape_cast %17 : vector<1x16x256xbf16> to vector<16x256xbf16>
    %c0_25 = arith.constant 0 : index
    %c8_26 = arith.constant 8 : index
    %c128_27 = arith.constant 128 : index
    %19 = vector.load %arg7[%c0_25, %c8_26, %c128_27] : memref<1x32x640xbf16, #tpu.memory_space<vmem>>, vector<1x16x256xbf16>
    %20 = vector.shape_cast %19 : vector<1x16x256xbf16> to vector<16x256xbf16>
    %c0_28 = arith.constant 0 : index
    %c9_29 = arith.constant 9 : index
    %c128_30 = arith.constant 128 : index
    %21 = vector.load %arg7[%c0_28, %c9_29, %c128_30] : memref<1x32x640xbf16, #tpu.memory_space<vmem>>, vector<1x16x256xbf16>
    %22 = vector.shape_cast %21 : vector<1x16x256xbf16> to vector<16x256xbf16>
    %23 = tpu.concatenate %18, %20, %22 in 1 : vector<16x256xbf16>, vector<16x256xbf16>, vector<16x256xbf16> -> vector<16x768xbf16>
    %c0_31 = arith.constant 0 : index
    %c7_32 = arith.constant 7 : index
    %c256 = arith.constant 256 : index
    %24 = vector.load %arg7[%c0_31, %c7_32, %c256] : memref<1x32x640xbf16, #tpu.memory_space<vmem>>, vector<1x16x256xbf16>
    %25 = vector.shape_cast %24 : vector<1x16x256xbf16> to vector<16x256xbf16>
    %c0_33 = arith.constant 0 : index
    %c8_34 = arith.constant 8 : index
    %c256_35 = arith.constant 256 : index
    %26 = vector.load %arg7[%c0_33, %c8_34, %c256_35] : memref<1x32x640xbf16, #tpu.memory_space<vmem>>, vector<1x16x256xbf16>
    %27 = vector.shape_cast %26 : vector<1x16x256xbf16> to vector<16x256xbf16>
    %c0_36 = arith.constant 0 : index
    %c9_37 = arith.constant 9 : index
    %c256_38 = arith.constant 256 : index
    %28 = vector.load %arg7[%c0_36, %c9_37, %c256_38] : memref<1x32x640xbf16, #tpu.memory_space<vmem>>, vector<1x16x256xbf16>
    %29 = vector.shape_cast %28 : vector<1x16x256xbf16> to vector<16x256xbf16>
    %30 = tpu.concatenate %25, %27, %29 in 1 : vector<16x256xbf16>, vector<16x256xbf16>, vector<16x256xbf16> -> vector<16x768xbf16>
    %c0_39 = arith.constant 0 : index
    %c7_40 = arith.constant 7 : index
    %c384 = arith.constant 384 : index
    %31 = vector.load %arg7[%c0_39, %c7_40, %c384] : memref<1x32x640xbf16, #tpu.memory_space<vmem>>, vector<1x16x256xbf16>
    %32 = vector.shape_cast %31 : vector<1x16x256xbf16> to vector<16x256xbf16>
    %c0_41 = arith.constant 0 : index
    %c8_42 = arith.constant 8 : index
    %c384_43 = arith.constant 384 : index
    %33 = vector.load %arg7[%c0_41, %c8_42, %c384_43] : memref<1x32x640xbf16, #tpu.memory_space<vmem>>, vector<1x16x256xbf16>
    %34 = vector.shape_cast %33 : vector<1x16x256xbf16> to vector<16x256xbf16>
    %c0_44 = arith.constant 0 : index
    %c9_45 = arith.constant 9 : index
    %c384_46 = arith.constant 384 : index
    %35 = vector.load %arg7[%c0_44, %c9_45, %c384_46] : memref<1x32x640xbf16, #tpu.memory_space<vmem>>, vector<1x16x256xbf16>
    %36 = vector.shape_cast %35 : vector<1x16x256xbf16> to vector<16x256xbf16>
    %37 = tpu.concatenate %32, %34, %36 in 1 : vector<16x256xbf16>, vector<16x256xbf16>, vector<16x256xbf16> -> vector<16x768xbf16>
    %38 = tpu.concatenate %16, %23, %30, %37 in 0 : vector<16x768xbf16>, vector<16x768xbf16>, vector<16x768xbf16>, vector<16x768xbf16> -> vector<64x768xbf16>
    %c0_47 = arith.constant 0 : index
    %c0_48 = arith.constant 0 : index
    %39 = vector.load %arg2[%c0_47, %c0_48] : memref<768x128xbf16, #tpu.memory_space<vmem>>, vector<768x128xbf16>
    %cst_49 = arith.constant dense<0.000000e+00> : vector<64x128xf32>
    %40 = tpu.matmul %38, %39, %cst_49 {dimension_numbers = #tpu.dot_dimension_numbers<[1], [0], [0], [1], [0, 0, 1, 1], [], []>} : vector<64x768xbf16>, vector<768x128xbf16>, vector<64x128xf32> -> vector<64x128xf32>
    %41 = vector.extract_strided_slice %40 {offsets = [0, 0], sizes = [16, 128], strides = [1, 1]} : vector<64x128xf32> to vector<16x128xf32>
    %42 = vector.extract_strided_slice %40 {offsets = [16, 0], sizes = [16, 128], strides = [1, 1]} : vector<64x128xf32> to vector<16x128xf32>
    %43 = vector.extract_strided_slice %40 {offsets = [32, 0], sizes = [16, 128], strides = [1, 1]} : vector<64x128xf32> to vector<16x128xf32>
    %44 = vector.extract_strided_slice %40 {offsets = [48, 0], sizes = [16, 128], strides = [1, 1]} : vector<64x128xf32> to vector<16x128xf32>
    %45 = tpu.concatenate %41, %42, %43, %44 in 1 : vector<16x128xf32>, vector<16x128xf32>, vector<16x128xf32>, vector<16x128xf32> -> vector<16x512xf32>
    %46 = vector.shape_cast %45 : vector<16x512xf32> to vector<1x16x512xf32>
    %c0_50 = arith.constant 0 : index
    %c0_51 = arith.constant 0 : index
    %47 = vector.load %arg4[%c0_50, %c0_51] : memref<1x512xf32, #tpu.memory_space<vmem>>, vector<1x512xf32>
    %48 = vector.shape_cast %47 : vector<1x512xf32> to vector<1x1x512xf32>
    %49 = vector.broadcast %48 : vector<1x1x512xf32> to vector<1x16x512xf32>
    %50 = arith.addf %46, %49 : vector<1x16x512xf32>
    %cst_52 = arith.constant 0.000000e+00 : f32
    %51 = vector.broadcast %cst_52 : f32 to vector<1x16x512xf32>
    %52 = arith.maximumf %50, %51 : vector<1x16x512xf32>
    %53 = arith.truncf %52 : vector<1x16x512xf32> to vector<1x16x512xbf16>
    %c0_53 = arith.constant 0 : index
    %c8_54 = arith.constant 8 : index
    %c32_55 = arith.constant 32 : index
    %54 = vector.load %arg7[%c0_53, %c8_54, %c32_55] : memref<1x32x640xbf16, #tpu.memory_space<vmem>>, vector<1x16x512xbf16>
    tpu.vector_store %arg7[%c0_53, %c8_54, %c32_55], %53 {strides = array<i32>} : memref<1x32x640xbf16, #tpu.memory_space<vmem>>, vector<1x16x512xbf16>,
    %c0_56 = arith.constant 0 : index
    %c7_57 = arith.constant 7 : index
    %c0_58 = arith.constant 0 : index
    %55 = vector.load %arg7[%c0_56, %c7_57, %c0_58] : memref<1x32x640xbf16, #tpu.memory_space<vmem>>, vector<1x16x256xbf16>
    %56 = vector.shape_cast %55 : vector<1x16x256xbf16> to vector<16x256xbf16>
    %c0_59 = arith.constant 0 : index
    %c8_60 = arith.constant 8 : index
    %c0_61 = arith.constant 0 : index
    %57 = vector.load %arg7[%c0_59, %c8_60, %c0_61] : memref<1x32x640xbf16, #tpu.memory_space<vmem>>, vector<1x16x256xbf16>
    %58 = vector.shape_cast %57 : vector<1x16x256xbf16> to vector<16x256xbf16>
    %c0_62 = arith.constant 0 : index
    %c9_63 = arith.constant 9 : index
    %c0_64 = arith.constant 0 : index
    %59 = vector.load %arg7[%c0_62, %c9_63, %c0_64] : memref<1x32x640xbf16, #tpu.memory_space<vmem>>, vector<1x16x256xbf16>
    %60 = vector.shape_cast %59 : vector<1x16x256xbf16> to vector<16x256xbf16>
    %61 = tpu.concatenate %56, %58, %60 in 1 : vector<16x256xbf16>, vector<16x256xbf16>, vector<16x256xbf16> -> vector<16x768xbf16>
    %c0_65 = arith.constant 0 : index
    %c7_66 = arith.constant 7 : index
    %c128_67 = arith.constant 128 : index
    %62 = vector.load %arg7[%c0_65, %c7_66, %c128_67] : memref<1x32x640xbf16, #tpu.memory_space<vmem>>, vector<1x16x256xbf16>
    %63 = vector.shape_cast %62 : vector<1x16x256xbf16> to vector<16x256xbf16>
    %c0_68 = arith.constant 0 : index
    %c8_69 = arith.constant 8 : index
    %c128_70 = arith.constant 128 : index
    %64 = vector.load %arg7[%c0_68, %c8_69, %c128_70] : memref<1x32x640xbf16, #tpu.memory_space<vmem>>, vector<1x16x256xbf16>
    %65 = vector.shape_cast %64 : vector<1x16x256xbf16> to vector<16x256xbf16>
    %c0_71 = arith.constant 0 : index
    %c9_72 = arith.constant 9 : index
    %c128_73 = arith.constant 128 : index
    %66 = vector.load %arg7[%c0_71, %c9_72, %c128_73] : memref<1x32x640xbf16, #tpu.memory_space<vmem>>, vector<1x16x256xbf16>
    %67 = vector.shape_cast %66 : vector<1x16x256xbf16> to vector<16x256xbf16>
    %68 = tpu.concatenate %63, %65, %67 in 1 : vector<16x256xbf16>, vector<16x256xbf16>, vector<16x256xbf16> -> vector<16x768xbf16>
    %c0_74 = arith.constant 0 : index
    %c7_75 = arith.constant 7 : index
    %c256_76 = arith.constant 256 : index
    %69 = vector.load %arg7[%c0_74, %c7_75, %c256_76] : memref<1x32x640xbf16, #tpu.memory_space<vmem>>, vector<1x16x256xbf16>
    %70 = vector.shape_cast %69 : vector<1x16x256xbf16> to vector<16x256xbf16>
    %c0_77 = arith.constant 0 : index
    %c8_78 = arith.constant 8 : index
    %c256_79 = arith.constant 256 : index
    %71 = vector.load %arg7[%c0_77, %c8_78, %c256_79] : memref<1x32x640xbf16, #tpu.memory_space<vmem>>, vector<1x16x256xbf16>
    %72 = vector.shape_cast %71 : vector<1x16x256xbf16> to vector<16x256xbf16>
    %c0_80 = arith.constant 0 : index
    %c9_81 = arith.constant 9 : index
    %c256_82 = arith.constant 256 : index
    %73 = vector.load %arg7[%c0_80, %c9_81, %c256_82] : memref<1x32x640xbf16, #tpu.memory_space<vmem>>, vector<1x16x256xbf16>
    %74 = vector.shape_cast %73 : vector<1x16x256xbf16> to vector<16x256xbf16>
    %75 = tpu.concatenate %70, %72, %74 in 1 : vector<16x256xbf16>, vector<16x256xbf16>, vector<16x256xbf16> -> vector<16x768xbf16>
    %c0_83 = arith.constant 0 : index
    %c7_84 = arith.constant 7 : index
    %c384_85 = arith.constant 384 : index
    %76 = vector.load %arg7[%c0_83, %c7_84, %c384_85] : memref<1x32x640xbf16, #tpu.memory_space<vmem>>, vector<1x16x256xbf16>
    %77 = vector.shape_cast %76 : vector<1x16x256xbf16> to vector<16x256xbf16>
    %c0_86 = arith.constant 0 : index
    %c8_87 = arith.constant 8 : index
    %c384_88 = arith.constant 384 : index
    %78 = vector.load %arg7[%c0_86, %c8_87, %c384_88] : memref<1x32x640xbf16, #tpu.memory_space<vmem>>, vector<1x16x256xbf16>
    %79 = vector.shape_cast %78 : vector<1x16x256xbf16> to vector<16x256xbf16>
    %c0_89 = arith.constant 0 : index
    %c9_90 = arith.constant 9 : index
    %c384_91 = arith.constant 384 : index
    %80 = vector.load %arg7[%c0_89, %c9_90, %c384_91] : memref<1x32x640xbf16, #tpu.memory_space<vmem>>, vector<1x16x256xbf16>
    %81 = vector.shape_cast %80 : vector<1x16x256xbf16> to vector<16x256xbf16>
    %82 = tpu.concatenate %77, %79, %81 in 1 : vector<16x256xbf16>, vector<16x256xbf16>, vector<16x256xbf16> -> vector<16x768xbf16>
    %83 = tpu.concatenate %61, %68, %75, %82 in 0 : vector<16x768xbf16>, vector<16x768xbf16>, vector<16x768xbf16>, vector<16x768xbf16> -> vector<64x768xbf16>
    %c0_92 = arith.constant 0 : index
    %c0_93 = arith.constant 0 : index
    %84 = vector.load %arg3[%c0_92, %c0_93] : memref<768x128xbf16, #tpu.memory_space<vmem>>, vector<768x128xbf16>
    %cst_94 = arith.constant dense<0.000000e+00> : vector<64x128xf32>
    %85 = tpu.matmul %83, %84, %cst_94 {dimension_numbers = #tpu.dot_dimension_numbers<[1], [0], [0], [1], [0, 0, 1, 1], [], []>} : vector<64x768xbf16>, vector<768x128xbf16>, vector<64x128xf32> -> vector<64x128xf32>
    %86 = vector.extract_strided_slice %85 {offsets = [0, 0], sizes = [16, 128], strides = [1, 1]} : vector<64x128xf32> to vector<16x128xf32>
    %87 = vector.extract_strided_slice %85 {offsets = [16, 0], sizes = [16, 128], strides = [1, 1]} : vector<64x128xf32> to vector<16x128xf32>
    %88 = vector.extract_strided_slice %85 {offsets = [32, 0], sizes = [16, 128], strides = [1, 1]} : vector<64x128xf32> to vector<16x128xf32>
    %89 = vector.extract_strided_slice %85 {offsets = [48, 0], sizes = [16, 128], strides = [1, 1]} : vector<64x128xf32> to vector<16x128xf32>
    %90 = tpu.concatenate %86, %87, %88, %89 in 1 : vector<16x128xf32>, vector<16x128xf32>, vector<16x128xf32>, vector<16x128xf32> -> vector<16x512xf32>
    %91 = vector.shape_cast %90 : vector<16x512xf32> to vector<1x16x512xf32>
    %c0_95 = arith.constant 0 : index
    %c0_96 = arith.constant 0 : index
    %92 = vector.load %arg5[%c0_95, %c0_96] : memref<1x512xf32, #tpu.memory_space<vmem>>, vector<1x512xf32>
    %93 = vector.shape_cast %92 : vector<1x512xf32> to vector<1x1x512xf32>
    %94 = vector.broadcast %93 : vector<1x1x512xf32> to vector<1x16x512xf32>
    %95 = arith.addf %91, %94 : vector<1x16x512xf32>
    %96 = arith.extf %8 : vector<1x16x512xbf16> to vector<1x16x512xf32>
    %97 = arith.addf %95, %96 : vector<1x16x512xf32>
    %cst_97 = arith.constant 0.000000e+00 : f32
    %98 = vector.broadcast %cst_97 : f32 to vector<1x16x512xf32>
    %99 = arith.maximumf %97, %98 : vector<1x16x512xf32>
    %c0_98 = arith.constant 0 : index
    %c0_99 = arith.constant 0 : index
    %c0_100 = arith.constant 0 : index
    %100 = vector.load %arg6[%c0_98, %c0_99, %c0_100] : memref<1x16x512xf32, #tpu.memory_space<vmem>>, vector<1x16x512xf32>
    tpu.vector_store %arg6[%c0_98, %c0_99, %c0_100], %99 {strides = array<i32>} : memref<1x16x512xf32, #tpu.memory_space<vmem>>, vector<1x16x512xf32>,
    return
  }
  func.func @transform_0(%arg0: i32) -> (i32, i32, i32) {
    %c0_i32 = arith.constant 0 : i32
    %c0_i32_0 = arith.constant 0 : i32
    %c0_i32_1 = arith.constant 0 : i32
    return %arg0, %c0_i32, %c0_i32_0 : i32, i32, i32
  }
  func.func @transform_1(%arg0: i32) -> (i32, i32) {
    %c0_i32 = arith.constant 0 : i32
    %c0_i32_0 = arith.constant 0 : i32
    %c0_i32_1 = arith.constant 0 : i32
    return %c0_i32, %c0_i32_0 : i32, i32
  }
  func.func @transform_2(%arg0: i32) -> (i32, i32) {
    %c0_i32 = arith.constant 0 : i32
    %c0_i32_0 = arith.constant 0 : i32
    %c0_i32_1 = arith.constant 0 : i32
    return %c0_i32, %c0_i32_0 : i32, i32
  }
  func.func @transform_3(%arg0: i32) -> (i32, i32) {
    %c0_i32 = arith.constant 0 : i32
    %c0_i32_0 = arith.constant 0 : i32
    %c0_i32_1 = arith.constant 0 : i32
    return %c0_i32, %c0_i32_0 : i32, i32
  }
  func.func @transform_4(%arg0: i32) -> (i32, i32) {
    %c0_i32 = arith.constant 0 : i32
    %c0_i32_0 = arith.constant 0 : i32
    %c0_i32_1 = arith.constant 0 : i32
    return %c0_i32, %c0_i32_0 : i32, i32
  }
  func.func @transform_5(%arg0: i32) -> (i32, i32, i32) {
    %c0_i32 = arith.constant 0 : i32
    %c0_i32_0 = arith.constant 0 : i32
    %c0_i32_1 = arith.constant 0 : i32
    return %arg0, %c0_i32, %c0_i32_0 : i32, i32, i32
  }
}

</mosaic_0001>

<bundles_post_ra>
// kernel: tile.13
= control target key start
LH: loop header
LB: loop body
LE: loop exit
PB: predicated region body
PF: predicated region fallthrough
CT: control target
= control target key end

     0   :  { %s28_s0 = inlined_call_operand.vmem [shape: f32[32], index: 0, kind: input, shape index: {}]   ;;  %s29_s1 = inlined_call_operand.vmem [shape: f32[16,32], index: 1, kind: output, shape index: {}]  }
   0x1   :  { %v4_v0 = vld [vmem:[%s28_s0] ss:$0 sm:$0xff] }
   0x2   :  { %5 = vst [vmem:[%s29_s1] sm:$0xff] %v4_v0 }
   0x3   :  { %8 = vst [vmem:[%s29_s1 + $0x8] sm:$0xff] %v4_v0 }

// kernel: tile.14
= control target key start
LH: loop header
LB: loop body
LE: loop exit
PB: predicated region body
PF: predicated region fallthrough
CT: control target
= control target key end

     0   :  { %s56_s8 = smov 96   ;;  %s57_s11 = smov 32   ;;  %vm3_vm0 = vcmask 261120   ;;  %vm9_vm1 = vcmask 1048320   ;;  %vm15_vm2 = vcmask 785920   ;;  %vm21_vm3 = vcmask 523520   ;;  %s93_s0 = inlined_call_operand.vmem [shape: f32[16,32], index: 0, kind: input, shape index: {}]   ;;  %s94_s1 = inlined_call_operand.vmem [shape: f32[1,512], index: 1, kind: output, shape index: {}]  }
   0x1   :  { %v47_v0 = vld [vmem:[%s93_s0 + $0x3] ss:$4 sm:$0xf]   ;;  %v49_v1 = vld [vmem:[%s93_s0 + $0x1] ss:$4 sm:$0xf]  }
   0x2   :  { %7 = vrot.lane.b32.xlu0 %v47_v0, %s56_s8  ;;  %19 = vrot.lane.b32.xlu1 %v49_v1, %s57_s11  ;;  %v48_v2 = vld [vmem:[%s93_s0 + $0x2] ss:$4 sm:$0xf]   ;;  %s58_s14 = smov 64  }
   0x3   :  { %v2_v3 = vld [vmem:[%s93_s0] ss:$4 sm:$0xf]  }
   0x4   :  { %4 = vst.msk [vmem:[#allocation0] ss:$8 sm:$0xf] %vm3_vm0, %v2_v3  }
   0xa   :  { %13 = vrot.lane.b32.xlu0 %v48_v2, %s58_s14 }
  0x74   :  { %v8_v4 = vpop.permute.xlu0 %7   ;;  %v20_v5 = vpop.permute.xlu1 %19  }
  0x75   :  { %10 = vst.msk [vmem:[#allocation0] ss:$8 sm:$0xf] %vm9_vm1, %v8_v4  }
  0x7c   :  { %v14_v6 = vpop.permute.xlu0 %13  }
  0x7d   :  { %16 = vst.msk [vmem:[#allocation0] ss:$8 sm:$0xf] %vm15_vm2, %v14_v6  }
  0x7e   :  { %22 = vst.msk [vmem:[#allocation0] ss:$8 sm:$0xf] %vm21_vm3, %v20_v5  }
  0x85   :  { %v25_v7 = vld [vmem:[#allocation0] sm:$0x1]  ;;  %v30_v8 = vld [vmem:[#allocation0 + $0x8] sm:$0x1]  ;;  %v36_v9 = vld [vmem:[#allocation0 + $0x10] sm:$0x1] }
  0x86   :  { %28 = vst [vmem:[%s94_s1] sm:$0x1] %v25_v7  ;;  %v42_v10 = vld [vmem:[#allocation0 + $0x18] sm:$0x1] }
  0x87   :  { %50 = vst [vmem:[%s94_s1 + $0x1] sm:$0x1] %v30_v8 }
  0x88   :  { %51 = vst [vmem:[%s94_s1 + $0x2] sm:$0x1] %v36_v9 }
  0x89   :  { %52 = vst [vmem:[%s94_s1 + $0x3] sm:$0x1] %v42_v10 }

// kernel: grou_basic_block.1
= control target key start
LH: loop header
LB: loop body
LE: loop exit
PB: predicated region body
PF: predicated region fallthrough
CT: control target
= control target key end

     0   :  { %s3283_s18 = smov 0   ;;  %s3928_s0 = inlined_call_operand.vmem [shape: bf16[2,16,512], index: 0, kind: input, shape index: {}]   ;;  %s3929_s1 = inlined_call_operand.vmem [shape: bf16[768,128], index: 1, kind: input, shape index: {}]   ;;  %s3930_s2 = inlined_call_operand.vmem [shape: bf16[768,128], index: 2, kind: input, shape index: {}]   ;;  %s3931_s3 = inlined_call_operand.vmem [shape: f32[1,512], index: 3, kind: input, shape index: {}]   ;;  %s3932_s4 = inlined_call_operand.vmem [shape: f32[1,512], index: 4, kind: input, shape index: {}]   ;;  %s3933_s5 = inlined_call_operand.vmem [shape: f32[2,16,512], index: 5, kind: output, shape index: {}]  }
   0x1 LB: > { %s2716_s19 = sadd.s32 4294967295, %s3249_s18   ;;  %p2720_p0 = scmp.ge.s32.totalorder %s3249_s18, 1  ;;  %s3249_s18 = sphi %s3283_s18, %s15_s18  }
   0x2   : > { %p187_p1 = scmp.lt.s32.totalorder %s3249_s18, 3 }
   0x4   : > { %p188_p2 = pnand %p2720_p0, %p187_p1 }
   0x5   : > { %p215_p3 = scmp.lt.s32.totalorder (!%p188_p2), %s2716_s19, 1  ;;  %s3252_s28 = smov (!%p188_p2), 32  }
   0x6   : > { %191 = sbr.rel (%p188_p2) target bundleno = 801 (0x321), region = 40 }
   0xb   : > { %v3138_v0 = vld [vmem:[%s3929_s1 + $0x38] sm:$0xff]  ;;  %vm258_vm0 = vcmask 257024   ;;  %vm261_vm1 = vcmask 1043712   ;;  %v3251_v2 = vmov 0   ;;  %s3945_s19 = smov (!%p215_p3, %s2716_s19), 1  ;;  %vm226_vm2 = vcmask 1043459  }
   0xc   : > { %v3146_v1 = vld [vmem:[%s3929_s1 + $0x78] sm:$0xff]  ;;  %259 = vst.msk [vmem:[#allocation2 + $0x14] sm:$0xf] %vm258_vm0, %v3251_v2  ;;  %1253 = vmatpush.bf16.msra.mxu0 %v3138_v0  ;;  %s3127_s24 = sshll.u32 %s3945_s19, 5  ;;  %vm227_vm3 = vsmask.f32 7950 }
   0xd   : > { %1282 = vmatpush.bf16.msra.mxu1 %v3146_v1  ;;  %262 = vst.msk [vmem:[#allocation2 + $0x24] sm:$0xf] %vm261_vm1, %v3251_v2  ;;  %s3307_s27 = scalar_lea.vmem %s3928_s0, %s3127_s24  ;;  %vm229_vm4 = vcmask 1047559   ;;  %vm230_vm5 = vsmask.f32 7966  ;;  %vm3317_vm6 = vmand %vm226_vm2, %vm227_vm3  ;;  %v3137_v11 = vld [vmem:[%s3929_s1 + $0x30] sm:$0xff] }
   0xe   : > { %260 = vst.msk [vmem:[#allocation2 + $0x28] sm:$0xf] %vm258_vm0, %v3251_v2  ;;  %v265_v3 = vld [vmem:[%s3307_s27 + $0x8] sm:$0xff]  ;;  %v264_v4 = vld [vmem:[%s3307_s27] sm:$0xff]  ;;  %v267_v5 = vld [vmem:[%s3307_s27 + $0x18] sm:$0xff]  ;;  %vm298_vm9 = vcmask 1047556  }
   0xf   : > { %263 = vst.msk [vmem:[#allocation2 + $0x38] sm:$0xf] %vm261_vm1, %v3251_v2  ;;  %274 = vrot.lane.b32.xlu1 %v265_v3, %s3252_s28  ;;  %272 = vrot.lane.b32.xlu0 %v264_v4, %s3252_s28  ;;  %v266_v6 = vld [vmem:[%s3307_s27 + $0x10] sm:$0xff]  ;;  %vm3321_vm7 = vmand %vm229_vm4, %vm230_vm5  ;;  %v236_v9 = vld [vmem:[#allocation2 + $0x8] sm:$0x88]  ;;  %vm284_vm10 = vcmask 261120  }
  0x10   : > { %vm232_vm8 = vmor %vm3321_vm7, %vm3317_vm6  ;;  %v3145_v12 = vld [vmem:[%s3929_s1 + $0x70] sm:$0xff]  ;;  %v3154_v13 = vld [vmem:[%s3929_s1 + $0xb8] sm:$0xff]  ;;  %1254 = vmatpush.bf16.msra.mxu0 %v3137_v11  ;;  %vm286_vm11 = vcmask 1043456   ;;  %vm246_vm13 = vsmask.f32 4352  ;;  %vm242_vm14 = vcmask 1040384  }
  0x11   : > { %v237_v10 = vsel %vm232_vm8, 0, %v236_v9  ;;  %v3162_v14 = vld [vmem:[%s3929_s1 + $0xf8] sm:$0xff]  ;;  %1283 = vmatpush.bf16.msra.mxu1 %v3145_v12  ;;  %v233_v15 = vld [vmem:[#allocation2] sm:$0x88]  ;;  %1311 = vmatpush.bf16.msra.mxu2 %v3154_v13  ;;  %v3136_v16 = vld [vmem:[%s3929_s1 + $0x28] sm:$0xff]  ;;  %vm346_vm5 = vcmask 1042432  }
  0x12   : > { %238 = vst [vmem:[#allocation2 + $0x8] sm:$0x88] %v237_v10  ;;  %1340 = vmatpush.bf16.msra.mxu3 %v3162_v14  ;;  %v3144_v17 = vld [vmem:[%s3929_s1 + $0x68] sm:$0xff]  ;;  %v234_v18 = vsel %vm232_vm8, 0, %v233_v15  ;;  %v3153_v19 = vld [vmem:[%s3929_s1 + $0xb0] sm:$0xff]  ;;  %v3135_v21 = vld [vmem:[%s3929_s1 + $0x20] sm:$0xff] }
  0x13   : > { %235 = vst [vmem:[#allocation2] sm:$0x88] %v234_v18  ;;  %v3161_v20 = vld [vmem:[%s3929_s1 + $0xf0] sm:$0xff]  ;;  %v3143_v22 = vld [vmem:[%s3929_s1 + $0x60] sm:$0xff]  ;;  %v3152_v23 = vld [vmem:[%s3929_s1 + $0xa8] sm:$0xff]  ;;  %s3128_s26 = sshll.u32 %s3945_s19, 6 }
  0x14   : > { %1255 = vmatpush.bf16.msra.mxu0 %v3136_v16  ;;  %v3160_v24 = vld [vmem:[%s3929_s1 + $0xe8] sm:$0xff]  ;;  %v3134_v25 = vld [vmem:[%s3929_s1 + $0x18] sm:$0xff]  ;;  %v3151_v27 = vld [vmem:[%s3929_s1 + $0xa0] sm:$0xff]  ;;  %vm243_vm15 = vsmask.f32 256 }
  0x15   : > { %1284 = vmatpush.bf16.msra.mxu1 %v3144_v17  ;;  %1312 = vmatpush.bf16.msra.mxu2 %v3153_v19  ;;  %v3142_v26 = vld [vmem:[%s3929_s1 + $0x58] sm:$0xff]  ;;  %v3159_v28 = vld [vmem:[%s3929_s1 + $0xe0] sm:$0xff]  ;;  %v3133_v29 = vld [vmem:[%s3929_s1 + $0x10] sm:$0xff] }
  0x16   : > { %1341 = vmatpush.bf16.msra.mxu3 %v3161_v20  ;;  %v3141_v30 = vld [vmem:[%s3929_s1 + $0x50] sm:$0xff]  ;;  %v3150_v31 = vld [vmem:[%s3929_s1 + $0x98] sm:$0xff]  ;;  %v3132_v33 = vld [vmem:[%s3929_s1 + $0x8] sm:$0xff] }
  0x17   : > { %278 = vrot.lane.b32.xlu1 %v267_v5, %s3252_s28  ;;  %276 = vrot.lane.b32.xlu0 %v266_v6, %s3252_s28  ;;  %v3158_v32 = vld [vmem:[%s3929_s1 + $0xd8] sm:$0xff]  ;;  %v3140_v34 = vld [vmem:[%s3929_s1 + $0x48] sm:$0xff]  ;;  %v239_v47 = vld [vmem:[#allocation2 + $0x10] sm:$0x8] }
  0x18   : > { %1256 = vmatpush.bf16.msra.mxu0 %v3135_v21  ;;  %v3149_v35 = vld [vmem:[%s3929_s1 + $0x90] sm:$0xff]  ;;  %v3131_v37 = vld [vmem:[%s3929_s1] sm:$0xff]  ;;  %v3148_v39 = vld [vmem:[%s3929_s1 + $0x88] sm:$0xff]  ;;  %v240_v51 = vsel %vm3317_vm6, 0, %v239_v47 }
  0x19   : > { %1285 = vmatpush.bf16.msra.mxu1 %v3143_v22  ;;  %1313 = vmatpush.bf16.msra.mxu2 %v3152_v23  ;;  %v3157_v36 = vld [vmem:[%s3929_s1 + $0xd0] sm:$0xff]  ;;  %v3139_v38 = vld [vmem:[%s3929_s1 + $0x40] sm:$0xff]  ;;  %v3156_v40 = vld [vmem:[%s3929_s1 + $0xc8] sm:$0xff]  ;;  %241 = vst [vmem:[#allocation2 + $0x10] sm:$0x8] %v240_v51 }
  0x1a   : > { %1342 = vmatpush.bf16.msra.mxu3 %v3160_v24  ;;  %v3170_v41 = vld [vmem:[%s3929_s1 + $0x138] sm:$0xff]  ;;  %v3147_v42 = vld [vmem:[%s3929_s1 + $0x80] sm:$0xff]  ;;  %vm3426_vm12 = vmor %vm298_vm9, %vm261_vm1  ;;  %vm245_vm1 = vcmask 1044484  }
  0x1b   : > { %v3155_v43 = vld [vmem:[%s3929_s1 + $0xc0] sm:$0xff]  ;;  %v3178_v46 = vld [vmem:[%s3929_s1 + $0x178] sm:$0xff]  ;;  %v3169_v55 = vld [vmem:[%s3929_s1 + $0x130] sm:$0xff] }
  0x1c   : > { %1257 = vmatpush.bf16.msra.mxu0 %v3134_v25  ;;  %v3177_v56 = vld [vmem:[%s3929_s1 + $0x170] sm:$0xff]  ;;  %v306_v57 = vld [vmem:[#allocation2] sm:$0x88]  ;;  %v3168_v10 = vld [vmem:[%s3929_s1 + $0x128] sm:$0xff] }
  0x1d   : > { %1286 = vmatpush.bf16.msra.mxu1 %v3142_v26  ;;  %1314 = vmatpush.bf16.msra.mxu2 %v3151_v27  ;;  %v313_v62 = vunpack.c.l.b16 %v306_v57  ;;  %v314_v63 = vunpack.c.h.b16 %v306_v57  ;;  %v3456_v8 = vld [vmem:[#allocation2 + $0x4] sm:$0x88]  ;;  %vm3548_vm2 = vmand %vm242_vm14, %vm243_vm15 }
  0x1e   : > { %1343 = vmatpush.bf16.msra.mxu3 %v3159_v28  ;;  %v3176_v11 = vld [vmem:[%s3929_s1 + $0x168] sm:$0xff]  ;;  %v360_v16 = vunpack.c.l.b16 %v3456_v8  ;;  %v361_v27 = vunpack.c.h.b16 %v3456_v8  ;;  %vm3554_vm3 = vmand %vm245_vm1, %vm246_vm13 }
  0x1f   : > { %v3468_v18 = vld [vmem:[#allocation2 + $0x8] sm:$0x88]  ;;  %vm248_vm4 = vmor %vm3554_vm3, %vm3548_vm2 }
  0x20   : > { %1258 = vmatpush.bf16.msra.mxu0 %v3133_v29  ;;  %v406_v28 = vunpack.c.l.b16 %v3468_v18 }
  0x21   : > { %1287 = vmatpush.bf16.msra.mxu1 %v3141_v30  ;;  %1315 = vmatpush.bf16.msra.mxu2 %v3150_v31  ;;  %v3167_v31 = vld [vmem:[%s3929_s1 + $0x120] sm:$0xff] }
  0x22   : > { %1344 = vmatpush.bf16.msra.mxu3 %v3158_v32  ;;  %v3175_v32 = vld [vmem:[%s3929_s1 + $0x160] sm:$0xff] }
  0x24   : > { %1259 = vmatpush.bf16.msra.mxu0 %v3132_v33 }
  0x25   : > { %1288 = vmatpush.bf16.msra.mxu1 %v3140_v34  ;;  %1316 = vmatpush.bf16.msra.mxu2 %v3149_v35  ;;  %v407_v34 = vunpack.c.h.b16 %v3468_v18 }
  0x26   : > { %1345 = vmatpush.bf16.msra.mxu3 %v3157_v36 }
  0x28   : > { %1260 = vmatpush.bf16.msra.mxu0 %v3131_v37 }
  0x29   : > { %1289 = vmatpush.bf16.msra.mxu1 %v3139_v38  ;;  %1317 = vmatpush.bf16.msra.mxu2 %v3148_v39 }
  0x2a   : > { %1346 = vmatpush.bf16.msra.mxu3 %v3156_v40 }
  0x2c   : > { %1369 = vmatpush.bf16.msrb.mxu0 %v3170_v41 }
  0x2d   : > { %1318 = vmatpush.bf16.msra.mxu2 %v3147_v42  ;;  %1398 = vmatpush.bf16.msrb.mxu1 %v3178_v46 }
  0x2e   : > { %1347 = vmatpush.bf16.msra.mxu3 %v3155_v43 }
  0x30   : > { %1370 = vmatpush.bf16.msrb.mxu0 %v3169_v55 }
  0x31   : > { %1399 = vmatpush.bf16.msrb.mxu1 %v3177_v56 }
  0x34   : > { %1371 = vmatpush.bf16.msrb.mxu0 %v3168_v10 }
  0x35   : > { %1400 = vmatpush.bf16.msrb.mxu1 %v3176_v11 }
  0x38   : > { %1372 = vmatpush.bf16.msrb.mxu0 %v3167_v31 }
  0x39   : > { %1401 = vmatpush.bf16.msrb.mxu1 %v3175_v32 }
  0x81   : > { %v275_v44 = vpop.permute.xlu1 %274  ;;  %v273_v45 = vpop.permute.xlu0 %272 }
  0x82   : > { %v281_v48 = vrot.slane %v275_v44, 4  ;;  %v280_v50 = vrot.slane %v273_v45, 4 }
  0x84   : > { %302 = vst.msk [vmem:[#allocation2 + $0x24] sm:$0xf] %vm258_vm0, %v281_v48  ;;  %v285_v52 = vsel %vm284_vm10, %v280_v50, %v273_v45  ;;  %v287_v53 = vsel %vm286_vm11, %v280_v50, %v281_v48 }
  0x85   : > { %v3436_v54 = vsel %vm284_vm10, %v287_v53, %v275_v44  ;;  %300 = vst.msk [vmem:[#allocation2 + $0x14] sm:$0xff] %vm3426_vm12, %v285_v52 }
  0x86   : > { %301 = vst [vmem:[#allocation2 + $0x1c] sm:$0xff] %v3436_v54  ;;  %v408_v33 = vunpack.c.l.b16 %v3436_v54 }
  0x89   : > { %v279_v58 = vpop.permute.xlu1 %278  ;;  %v277_v59 = vpop.permute.xlu0 %276 }
  0x8a   : > { %v283_v60 = vrot.slane %v279_v58, 4  ;;  %v282_v61 = vrot.slane %v277_v59, 4 }
  0x8c   : > { %305 = vst.msk [vmem:[#allocation2 + $0x38] sm:$0xf] %vm258_vm0, %v283_v60  ;;  %v289_v0 = vsel %vm284_vm10, %v282_v61, %v277_v59  ;;  %v290_v1 = vsel %vm286_vm11, %v282_v61, %v283_v60  ;;  %v307_v2 = vld [vmem:[#allocation2 + $0x14] sm:$0xff] }
  0x8d   : > { %v3451_v3 = vsel %vm284_vm10, %v290_v1, %v279_v58  ;;  %303 = vst.msk [vmem:[#allocation2 + $0x28] sm:$0xff] %vm3426_vm12, %v289_v0  ;;  %v315_v4 = vunpack.c.l.b16 %v307_v2  ;;  %v316_v5 = vunpack.c.h.b16 %v307_v2  ;;  %v3458_v9 = vld [vmem:[#allocation2 + $0x18] sm:$0xff] }
  0x8e   : > { %304 = vst [vmem:[#allocation2 + $0x30] sm:$0xff] %v3451_v3  ;;  %v362_v17 = vunpack.c.l.b16 %v3458_v9  ;;  %v363_v30 = vunpack.c.h.b16 %v3458_v9 }
  0x8f   : > { %v319_v6 = vpack.c.b16 %v315_v4, %v313_v62  ;;  %v320_v7 = vpack.c.b16 %v316_v5, %v314_v63 }
  0x90   : > { %v3472_v29 = vpack.c.b16 %v362_v17, %v360_v16 }
  0x91   : > { %v502_v12 = vshrl.u32 %v319_v6, 16  ;;  %v505_v13 = vshll.u32 %v319_v6, 16  ;;  %v519_v14 = vshrl.u32 %v320_v7, 16  ;;  %v522_v15 = vshll.u32 %v320_v7, 16 }
  0x92   : > { %v594_v16 = vshrl.u32 %v3472_v29, 16 }
  0x93   : > { %v504_v20 = vrot.slane %v502_v12, 3  ;;  %v507_v21 = vrot.slane %v505_v13, 4  ;;  %v521_v22 = vrot.slane %v519_v14, 3  ;;  %v524_v23 = vrot.slane %v522_v15, 4  ;;  %v3166_v14 = vld [vmem:[%s3929_s1 + $0x118] sm:$0xff] }
  0x94   : > { %v308_v19 = vld [vmem:[#allocation2 + $0x28] sm:$0xff]  ;;  %v3174_v15 = vld [vmem:[%s3929_s1 + $0x158] sm:$0xff]  ;;  %1373 = vmatpush.bf16.msrb.mxu0 %v3166_v14 }
  0x95   : > { %v317_v24 = vunpack.c.l.b16 %v308_v19  ;;  %v318_v25 = vunpack.c.h.b16 %v308_v19  ;;  %v355_v26 = vld [vmem:[#allocation2 + $0x2c] sm:$0xff]  ;;  %v508_v39 = vor.u32 %v507_v21, %v504_v20  ;;  %v525_v40 = vor.u32 %v524_v23, %v521_v22  ;;  %1402 = vmatpush.bf16.msrb.mxu1 %v3174_v15 }
  0x96   : > { %v364_v41 = vunpack.c.l.b16 %v355_v26  ;;  %v365_v42 = vunpack.c.h.b16 %v355_v26 }
  0x97   : > { %v321_v35 = vpack.c.b16 %v317_v24, %v317_v24  ;;  %v322_v36 = vpack.c.b16 %v318_v25, %v318_v25  ;;  %v3483_v37 = vpack.c.b16 %v317_v24, %v315_v4  ;;  %v3485_v38 = vpack.c.b16 %v318_v25, %v316_v5 }
  0x98   : > { %v368_v63 = vpack.c.b16 %v364_v41, %v364_v41  ;;  %v3491_v0 = vpack.c.b16 %v364_v41, %v362_v17  ;;  %v367_v4 = vpack.c.b16 %v363_v30, %v361_v27  ;;  %v409_v5 = vunpack.c.h.b16 %v3436_v54 }
  0x99   : > { %v510_v43 = vshrl.u32 %v321_v35, 16  ;;  %v513_v44 = vshll.u32 %v321_v35, 16  ;;  %v527_v45 = vshrl.u32 %v322_v36, 16  ;;  %v530_v46 = vshll.u32 %v322_v36, 16 }
  0x9a   : > { %v326_v47 = vshrl.u32 %v3483_v37, 16  ;;  %v329_v48 = vshll.u32 %v3483_v37, 16  ;;  %v334_v50 = vshrl.u32 %v3485_v38, 16  ;;  %v337_v51 = vshll.u32 %v3485_v38, 16 }
  0x9b   : > { %v512_v52 = vrot.slane %v510_v43, 3  ;;  %v515_v53 = vrot.slane %v513_v44, 4  ;;  %v529_v55 = vrot.slane %v527_v45, 3  ;;  %v532_v56 = vrot.slane %v530_v46, 4 }
  0x9c   : > { %v328_v57 = vrot.slane %v326_v47, 4  ;;  %v331_v58 = vrot.slane %v329_v48, 5  ;;  %v336_v59 = vrot.slane %v334_v50, 4  ;;  %v339_v60 = vrot.slane %v337_v51, 5  ;;  %v3165_v47 = vld [vmem:[%s3929_s1 + $0x110] sm:$0xff] }
  0x9d   : > { %v516_v61 = vor.u32 %v515_v53, %v512_v52  ;;  %v533_v62 = vor.u32 %v532_v56, %v529_v55  ;;  %v369_v8 = vpack.c.b16 %v365_v42, %v365_v42  ;;  %v3496_v9 = vpack.c.b16 %v365_v42, %v363_v30  ;;  %v3173_v48 = vld [vmem:[%s3929_s1 + $0x150] sm:$0xff]  ;;  %1374 = vmatpush.bf16.msrb.mxu0 %v3165_v47 }
  0x9e   : > { %v332_v1 = vor.u32 %v331_v58, %v328_v57  ;;  %v340_v2 = vor.u32 %v339_v60, %v336_v59  ;;  %v602_v17 = vshrl.u32 %v368_v63, 16  ;;  %v605_v19 = vshll.u32 %v368_v63, 16  ;;  %1403 = vmatpush.bf16.msrb.mxu1 %v3173_v48  ;;  %v445_v48 = vld [vmem:[#allocation2 + $0xc] sm:$0x88] }
  0x9f   : > { %v517_v6 = vsel %vm246_vm13, %v508_v39, %v516_v61  ;;  %v534_v7 = vsel %vm246_vm13, %v525_v40, %v533_v62  ;;  %v373_v20 = vshrl.u32 %v3491_v0, 16  ;;  %v619_v25 = vshrl.u32 %v369_v8, 16 }
  0xa0   : > { %1261 = vmatmul.bf16.vlgmr.msra.gmra.mxu0 %v517_v6  ;;  %1290 = vmatmul.bf16.vlgmr.msra.gmra.mxu1 %v534_v7  ;;  %v536_v10 = vshrl.u32 %v332_v1, 16  ;;  %v539_v11 = vshll.u32 %v332_v1, 16  ;;  %v545_v12 = vshrl.u32 %v340_v2, 16  ;;  %v548_v13 = vshll.u32 %v340_v2, 16 }
  0xa1   : > { %v622_v26 = vshll.u32 %v369_v8, 16  ;;  %v375_v27 = vrot.slane %v373_v20, 4  ;;  %v376_v30 = vshll.u32 %v3491_v0, 16  ;;  %v381_v35 = vshrl.u32 %v3496_v9, 16  ;;  %v3164_v20 = vld [vmem:[%s3929_s1 + $0x108] sm:$0xff] }
  0xa2   : > { %v538_v21 = vrot.slane %v536_v10, 3  ;;  %v541_v22 = vrot.slane %v539_v11, 4  ;;  %v547_v23 = vrot.slane %v545_v12, 3  ;;  %v550_v24 = vrot.slane %v548_v13, 4  ;;  %1375 = vmatpush.bf16.msrb.mxu0 %v3164_v20 }
  0xa3   : > { %v384_v36 = vshll.u32 %v3496_v9, 16  ;;  %v597_v39 = vshll.u32 %v3472_v29, 16  ;;  %v611_v40 = vshrl.u32 %v367_v4, 16  ;;  %v614_v41 = vshll.u32 %v367_v4, 16 }
  0xa4   : > { %v542_v31 = vor.u32 %v541_v22, %v538_v21  ;;  %v551_v32 = vor.u32 %v550_v24, %v547_v23  ;;  %v378_v42 = vrot.slane %v376_v30, 5  ;;  %v604_v43 = vrot.slane %v602_v17, 3  ;;  %v3172_v21 = vld [vmem:[%s3929_s1 + $0x148] sm:$0xff] }
  0xa5   : > { %v383_v44 = vrot.slane %v381_v35, 4  ;;  %v386_v45 = vrot.slane %v384_v36, 5  ;;  %v410_v46 = vunpack.c.l.b16 %v3451_v3  ;;  %v607_v50 = vrot.slane %v605_v19, 4  ;;  %1404 = vmatpush.bf16.msrb.mxu1 %v3172_v21 }
  0xa6   : > { %1319 = vmatmul.bf16.vlgmr.msra.gmra.mxu2 %v542_v31  ;;  %1348 = vmatmul.bf16.vlgmr.msra.gmra.mxu3 %v551_v32  ;;  %v621_v29 = vrot.slane %v619_v25, 3  ;;  %v624_v51 = vrot.slane %v622_v26, 4  ;;  %v379_v52 = vor.u32 %v378_v42, %v375_v27  ;;  %v411_v55 = vunpack.c.h.b16 %v3451_v3  ;;  %v447_v42 = vld [vmem:[#allocation2 + $0x34] sm:$0xff] }
  0xa7   : > { %v387_v53 = vor.u32 %v386_v45, %v383_v44  ;;  %v596_v56 = vrot.slane %v594_v16, 3  ;;  %v599_v57 = vrot.slane %v597_v39, 4  ;;  %v613_v58 = vrot.slane %v611_v40, 3 }
  0xa8   : > { %v616_v59 = vrot.slane %v614_v41, 4  ;;  %v412_v60 = vpack.c.b16 %v408_v33, %v406_v28  ;;  %v3524_v61 = vpack.c.b16 %v410_v46, %v408_v33  ;;  %v608_v62 = vor.u32 %v607_v50, %v604_v43 }
  0xa9   : > { %v625_v63 = vor.u32 %v624_v51, %v621_v29  ;;  %v628_v3 = vshrl.u32 %v379_v52, 16  ;;  %v413_v1 = vpack.c.b16 %v409_v5, %v407_v34  ;;  %v631_v2 = vshll.u32 %v379_v52, 16  ;;  %v446_v51 = vld [vmem:[#allocation2 + $0x20] sm:$0xff] }
  0xaa   : > { %v637_v4 = vshrl.u32 %v387_v53, 16  ;;  %v640_v6 = vshll.u32 %v387_v53, 16  ;;  %v3532_v28 = vpack.c.b16 %v411_v55, %v409_v5  ;;  %v600_v7 = vor.u32 %v599_v57, %v596_v56  ;;  %v3163_v52 = vld [vmem:[%s3929_s1 + $0x100] sm:$0xff] }
  0xab   : > { %v617_v33 = vor.u32 %v616_v59, %v613_v58  ;;  %v414_v8 = vpack.c.b16 %v410_v46, %v410_v46  ;;  %v415_v10 = vpack.c.b16 %v411_v55, %v411_v55  ;;  %v686_v11 = vshrl.u32 %v412_v60, 16  ;;  %v3171_v53 = vld [vmem:[%s3929_s1 + $0x140] sm:$0xff]  ;;  %1376 = vmatpush.bf16.msrb.mxu0 %v3163_v52 }
  0xac   : > { %v689_v12 = vshll.u32 %v412_v60, 16  ;;  %v419_v13 = vshrl.u32 %v3524_v61, 16  ;;  %v422_v18 = vshll.u32 %v3524_v61, 16  ;;  %v609_v14 = vsel %vm246_vm13, %v600_v7, %v608_v62  ;;  %v249_v59 = vld [vmem:[#allocation2 + $0x3c] sm:$0x11]  ;;  %1405 = vmatpush.bf16.msrb.mxu1 %v3171_v53 }
  0xad   : > { %v626_v34 = vsel %vm246_vm13, %v617_v33, %v625_v63  ;;  %v427_v15 = vshrl.u32 %v3532_v28, 16  ;;  %v430_v54 = vshll.u32 %v3532_v28, 16  ;;  %v630_v5 = vrot.slane %v628_v3, 3 }
  0xae   : > { %v633_v16 = vrot.slane %v631_v2, 4  ;;  %v639_v17 = vrot.slane %v637_v4, 3  ;;  %v642_v19 = vrot.slane %v640_v6, 4  ;;  %v694_v22 = vshrl.u32 %v414_v8, 16  ;;  %v252_v4 = vld [vmem:[#allocation2 + $0x44] sm:$0x11] }
  0xaf   : > { %v697_v23 = vshll.u32 %v414_v8, 16  ;;  %v711_v24 = vshrl.u32 %v415_v10, 16  ;;  %v714_v25 = vshll.u32 %v415_v10, 16  ;;  %v421_v26 = vrot.slane %v419_v13, 4 }
  0xb0   : > { %1266 = vmatmul.bf16.gmra.mxu0 %v609_v14  ;;  %1295 = vmatmul.bf16.gmra.mxu1 %v626_v34  ;;  %v424_v27 = vrot.slane %v422_v18, 5  ;;  %v703_v30 = vshrl.u32 %v413_v1, 16  ;;  %v706_v31 = vshll.u32 %v413_v1, 16  ;;  %v429_v32 = vrot.slane %v427_v15, 4 }
  0xb1   : > { %v432_v35 = vrot.slane %v430_v54, 5  ;;  %v634_v36 = vor.u32 %v633_v16, %v630_v5  ;;  %v643_v39 = vor.u32 %v642_v19, %v639_v17  ;;  %v688_v40 = vrot.slane %v686_v11, 3 }
  0xb2   : > { %v691_v41 = vrot.slane %v689_v12, 4  ;;  %v696_v44 = vrot.slane %v694_v22, 3  ;;  %v699_v45 = vrot.slane %v697_v23, 4  ;;  %v713_v46 = vrot.slane %v711_v24, 3 }
  0xb3   : > { %v716_v47 = vrot.slane %v714_v25, 4  ;;  %v425_v29 = vor.u32 %v424_v27, %v421_v26  ;;  %v705_v55 = vrot.slane %v703_v30, 3  ;;  %v708_v56 = vrot.slane %v706_v31, 4 }
  0xb4   : > { %v433_v57 = vor.u32 %v432_v35, %v429_v32  ;;  %v458_v58 = vunpack.c.l.b16 %v447_v42  ;;  %v454_v60 = vunpack.c.l.b16 %v445_v48  ;;  %v459_v62 = vunpack.c.h.b16 %v447_v42 }
  0xb5   : > { %v692_v63 = vor.u32 %v691_v41, %v688_v40  ;;  %v700_v3 = vor.u32 %v699_v45, %v696_v44  ;;  %v717_v1 = vor.u32 %v716_v47, %v713_v46  ;;  %v456_v2 = vunpack.c.l.b16 %v446_v51 }
  0xb6   : > { %1324 = vmatmul.bf16.gmra.mxu2 %v634_v36  ;;  %1353 = vmatmul.bf16.gmra.mxu3 %v643_v39  ;;  %v720_v6 = vshrl.u32 %v425_v29, 16  ;;  %v723_v7 = vshll.u32 %v425_v29, 16  ;;  %v457_v33 = vunpack.c.h.b16 %v446_v51  ;;  %v250_v8 = vsel %vm248_vm4, 0, %v249_v59 }
  0xb7   : > { %v709_v10 = vor.u32 %v708_v56, %v705_v55  ;;  %v729_v11 = vshrl.u32 %v433_v57, 16  ;;  %v732_v12 = vshll.u32 %v433_v57, 16  ;;  %v464_v13 = vpack.c.b16 %v458_v58, %v456_v2  ;;  %251 = vst [vmem:[#allocation2 + $0x3c] sm:$0x11] %v250_v8 }
  0xb8   : > { %v465_v18 = vpack.c.b16 %v459_v62, %v457_v33  ;;  %v253_v14 = vsel %vm248_vm4, 0, %v252_v4  ;;  %v701_v34 = vsel %vm246_vm13, %v692_v63, %v700_v3  ;;  %v460_v54 = vpack.c.b16 %v456_v2, %v454_v60 }
  0xb9   : > { %v718_v15 = vsel %vm246_vm13, %v709_v10, %v717_v1  ;;  %v455_v5 = vunpack.c.h.b16 %v445_v48  ;;  %254 = vst [vmem:[#allocation2 + $0x44] sm:$0x11] %v253_v14  ;;  %v722_v16 = vrot.slane %v720_v6, 3  ;;  %v725_v17 = vrot.slane %v723_v7, 4 }
  0xba   : > { %v462_v19 = vpack.c.b16 %v458_v58, %v458_v58  ;;  %v463_v20 = vpack.c.b16 %v459_v62, %v459_v62  ;;  %v731_v21 = vrot.slane %v729_v11, 3  ;;  %v734_v22 = vrot.slane %v732_v12, 4 }
  0xbb   : > { %v467_v23 = vshrl.u32 %v464_v13, 16  ;;  %v470_v24 = vshll.u32 %v464_v13, 16  ;;  %v475_v25 = vshrl.u32 %v465_v18, 16  ;;  %v478_v26 = vshll.u32 %v465_v18, 16 }
  0xbc   : > { %v778_v27 = vshrl.u32 %v460_v54, 16  ;;  %v781_v30 = vshll.u32 %v460_v54, 16  ;;  %v461_v31 = vpack.c.b16 %v457_v33, %v455_v5  ;;  %v786_v32 = vshrl.u32 %v462_v19, 16 }
  0xbd   : > { %v789_v35 = vshll.u32 %v462_v19, 16  ;;  %v803_v36 = vshrl.u32 %v463_v20, 16  ;;  %v806_v39 = vshll.u32 %v463_v20, 16  ;;  %v726_v41 = vor.u32 %v725_v17, %v722_v16  ;;  %v255_v16 = vld [vmem:[#allocation2 + $0x4c] sm:$0x1] }
  0xbe   : > { %v309_v40 = vld [vmem:[#allocation2 + $0x3c] sm:$0x11]  ;;  %v735_v42 = vor.u32 %v734_v22, %v731_v21  ;;  %v469_v44 = vrot.slane %v467_v23, 4  ;;  %v472_v45 = vrot.slane %v470_v24, 5  ;;  %v477_v46 = vrot.slane %v475_v25, 4 }
  0xbf   : > { %v480_v47 = vrot.slane %v478_v26, 5  ;;  %v342_v48 = vunpack.c.l.b16 %v309_v40  ;;  %v343_v50 = vunpack.c.h.b16 %v309_v40  ;;  %v780_v29 = vrot.slane %v778_v27, 3 }
  0xc0   : > { %1271 = vmatmul.bf16.gmra.mxu0 %v701_v34  ;;  %1300 = vmatmul.bf16.gmra.mxu1 %v718_v15  ;;  %v783_v51 = vrot.slane %v781_v30, 4  ;;  %v795_v52 = vshrl.u32 %v461_v31, 16  ;;  %v798_v53 = vshll.u32 %v461_v31, 16  ;;  %v788_v55 = vrot.slane %v786_v32, 3  ;;  %v356_v21 = vld [vmem:[#allocation2 + $0x40] sm:$0x11] }
  0xc1   : > { %v791_v56 = vrot.slane %v789_v35, 4  ;;  %v805_v57 = vrot.slane %v803_v36, 3  ;;  %v808_v58 = vrot.slane %v806_v39, 4  ;;  %v473_v59 = vor.u32 %v472_v45, %v469_v44 }
  0xc2   : > { %v481_v60 = vor.u32 %v480_v47, %v477_v46  ;;  %v344_v62 = vpack.c.b16 %v342_v48, %v342_v48  ;;  %v345_v63 = vpack.c.b16 %v343_v50, %v343_v50  ;;  %v797_v3 = vrot.slane %v795_v52, 3 }
  0xc3   : > { %v800_v1 = vrot.slane %v798_v53, 4  ;;  %v784_v2 = vor.u32 %v783_v51, %v780_v29  ;;  %v792_v4 = vor.u32 %v791_v56, %v788_v55  ;;  %v809_v6 = vor.u32 %v808_v58, %v805_v57 }
  0xc4   : > { %v812_v7 = vshrl.u32 %v473_v59, 16  ;;  %v815_v33 = vshll.u32 %v473_v59, 16  ;;  %v347_v8 = vrot.slane %v3483_v37, 5  ;;  %v348_v10 = vrot.slane %v3485_v38, 5 }
  0xc5   : > { %v821_v11 = vshrl.u32 %v481_v60, 16  ;;  %v824_v12 = vshll.u32 %v481_v60, 16  ;;  %v349_v13 = vrot.slane %v344_v62, 5  ;;  %v351_v18 = vrot.slane %v345_v63, 5  ;;  %v402_v62 = vld [vmem:[#allocation2 + $0x44] sm:$0x11] }
  0xc6   : > { %1329 = vmatmul.bf16.gmra.mxu2 %v726_v41  ;;  %1358 = vmatmul.bf16.gmra.mxu3 %v735_v42  ;;  %v801_v14 = vor.u32 %v800_v1, %v797_v3  ;;  %v793_v34 = vsel %vm246_vm13, %v784_v2, %v792_v4  ;;  %v814_v54 = vrot.slane %v812_v7, 3  ;;  %v817_v5 = vrot.slane %v815_v33, 4 }
  0xc7   : > { %v823_v17 = vrot.slane %v821_v11, 3  ;;  %v826_v19 = vrot.slane %v824_v12, 4  ;;  %v350_v37 = vsel %vm346_vm5, %v347_v8, %v349_v13  ;;  %v352_v38 = vsel %vm346_vm5, %v348_v10, %v351_v18 }
  0xc8   : > { %v810_v15 = vsel %vm246_vm13, %v801_v14, %v809_v6  ;;  %v554_v20 = vshrl.u32 %v347_v8, 16  ;;  %v557_v22 = vshll.u32 %v347_v8, 16  ;;  %v571_v23 = vshrl.u32 %v348_v10, 16 }
  0xc9   : > { %v574_v24 = vshll.u32 %v348_v10, 16  ;;  %v256_v25 = vsel %vm3548_vm2, 0, %v255_v16  ;;  %v562_v26 = vshrl.u32 %v350_v37, 16  ;;  %v565_v27 = vshll.u32 %v350_v37, 16 }
  0xca   : > { %v579_v30 = vshrl.u32 %v352_v38, 16  ;;  %v582_v31 = vshll.u32 %v352_v38, 16  ;;  %257 = vst [vmem:[#allocation2 + $0x4c] sm:$0x1] %v256_v25  ;;  %v818_v32 = vor.u32 %v817_v5, %v814_v54  ;;  %v827_v35 = vor.u32 %v826_v19, %v823_v17 }
  0xcb   : > { %v389_v36 = vunpack.c.l.b16 %v356_v21  ;;  %v390_v39 = vunpack.c.h.b16 %v356_v21  ;;  %v556_v40 = vrot.slane %v554_v20, 3  ;;  %v559_v41 = vrot.slane %v557_v22, 4 }
  0xcc   : > { %v573_v42 = vrot.slane %v571_v23, 3  ;;  %v576_v44 = vrot.slane %v574_v24, 4  ;;  %v564_v45 = vrot.slane %v562_v26, 3  ;;  %v567_v46 = vrot.slane %v565_v27, 4 }
  0xcd   : > { %v581_v47 = vrot.slane %v579_v30, 3  ;;  %v584_v43 = vrot.slane %v582_v31, 4  ;;  %v391_v48 = vpack.c.b16 %v389_v36, %v389_v36  ;;  %v392_v50 = vpack.c.b16 %v390_v39, %v390_v39 }
  0xce   : > { %v560_v29 = vor.u32 %v559_v41, %v556_v40  ;;  %v568_v51 = vor.u32 %v567_v46, %v564_v45  ;;  %v577_v52 = vor.u32 %v576_v44, %v573_v42  ;;  %v393_v55 = vrot.slane %v3491_v0, 5  ;;  %v3130_v44 = vld [vmem:[#allocation2 + $0x30] sm:$0xf0]  ;;  %v3129_v45 = vld [vmem:[#allocation2 + $0x24] sm:$0xf] }
  0xcf   : > { %v585_v53 = vor.u32 %v584_v43, %v581_v47  ;;  %v395_v56 = vrot.slane %v391_v48, 5  ;;  %v394_v57 = vrot.slane %v3496_v9, 5  ;;  %v397_v58 = vrot.slane %v392_v50, 5  ;;  %v2729_v46 = vld [vmem:[#allocation2 + $0x34] sm:$0xf0] }
  0xd0   : > { %1276 = vmatmul.bf16.gmra.mxu0 %v793_v34  ;;  %1305 = vmatmul.bf16.gmra.mxu1 %v810_v15  ;;  %v569_v59 = vsel %vm246_vm13, %v560_v29, %v568_v51  ;;  %v646_v1 = vshrl.u32 %v393_v55, 16  ;;  %v649_v2 = vshll.u32 %v393_v55, 16  ;;  %v435_v0 = vunpack.c.l.b16 %v402_v62 }
  0xd1   : > { %v586_v60 = vsel %vm246_vm13, %v577_v52, %v585_v53  ;;  %v396_v63 = vsel %vm346_vm5, %v393_v55, %v395_v56  ;;  %v398_v3 = vsel %vm346_vm5, %v394_v57, %v397_v58  ;;  %v663_v4 = vshrl.u32 %v394_v57, 16  ;;  %v450_v30 = vld [vmem:[#allocation2 + $0x48] sm:$0x11]  ;;  %v2727_v55 = vld [vmem:[#allocation2 + $0x20] sm:$0xf] }
  0xd2   : > { %v666_v6 = vshll.u32 %v394_v57, 16  ;;  %v654_v7 = vshrl.u32 %v396_v63, 16  ;;  %v657_v33 = vshll.u32 %v396_v63, 16  ;;  %v671_v9 = vshrl.u32 %v398_v3, 16 }
  0xd3   : > { %v674_v8 = vshll.u32 %v398_v3, 16  ;;  %v436_v10 = vunpack.c.h.b16 %v402_v62  ;;  %v648_v11 = vrot.slane %v646_v1, 3  ;;  %v651_v12 = vrot.slane %v649_v2, 4 }
  0xd4   : > { %v665_v13 = vrot.slane %v663_v4, 3  ;;  %v668_v18 = vrot.slane %v666_v6, 4  ;;  %v437_v14 = vpack.c.b16 %v435_v0, %v435_v0  ;;  %v656_v34 = vrot.slane %v654_v7, 3 }
  0xd5   : > { %v659_v15 = vrot.slane %v657_v33, 4  ;;  %v673_v54 = vrot.slane %v671_v9, 3  ;;  %v676_v5 = vrot.slane %v674_v8, 4  ;;  %v438_v16 = vpack.c.b16 %v436_v10, %v436_v10 }
  0xd6   : > { %1334 = vmatmul.bf16.gmra.mxu2 %v818_v32  ;;  %1363 = vmatmul.bf16.gmra.mxu3 %v827_v35  ;;  %v652_v17 = vor.u32 %v651_v12, %v648_v11  ;;  %v669_v19 = vor.u32 %v668_v18, %v665_v13  ;;  %v439_v20 = vrot.slane %v3524_v61, 5  ;;  %v441_v21 = vrot.slane %v437_v14, 5 }
  0xd7   : > { %v660_v37 = vor.u32 %v659_v15, %v656_v34  ;;  %v677_v38 = vor.u32 %v676_v5, %v673_v54  ;;  %v440_v22 = vrot.slane %v3532_v28, 5  ;;  %v443_v23 = vrot.slane %v438_v16, 5 }
  0xd8   : > { %v442_v26 = vsel %vm346_vm5, %v439_v20, %v441_v21  ;;  %v738_v31 = vshrl.u32 %v439_v20, 16  ;;  %v741_v32 = vshll.u32 %v439_v20, 16  ;;  %v489_v41 = vunpack.c.l.b16 %v450_v30 }
  0xd9   : > { %v661_v24 = vsel %vm246_vm13, %v652_v17, %v660_v37  ;;  %v678_v25 = vsel %vm246_vm13, %v669_v19, %v677_v38  ;;  %v444_v27 = vsel %vm346_vm5, %v440_v22, %v443_v23  ;;  %v746_v35 = vshrl.u32 %v442_v26, 16 }
  0xda   : > { %v749_v36 = vshll.u32 %v442_v26, 16  ;;  %v755_v61 = vshrl.u32 %v440_v22, 16  ;;  %v758_v39 = vshll.u32 %v440_v22, 16  ;;  %v763_v40 = vshrl.u32 %v444_v27, 16 }
  0xdb   : > { %v766_v28 = vshll.u32 %v444_v27, 16  ;;  %v490_v42 = vunpack.c.h.b16 %v450_v30  ;;  %v740_v47 = vrot.slane %v738_v31, 3  ;;  %v743_v43 = vrot.slane %v741_v32, 4 }
  0xdc   : > { %v748_v48 = vrot.slane %v746_v35, 3  ;;  %v751_v50 = vrot.slane %v749_v36, 4  ;;  %v757_v29 = vrot.slane %v755_v61, 3  ;;  %v760_v51 = vrot.slane %v758_v39, 4 }
  0xdd   : > { %v765_v52 = vrot.slane %v763_v40, 3  ;;  %v768_v53 = vrot.slane %v766_v28, 4  ;;  %v2728_v56 = vor.u32 %v3130_v44, %v2727_v55  ;;  %v493_v57 = vpack.c.b16 %v489_v41, %v489_v41 }
  0xde   : > { %v2732_v58 = vor.u32 %v3129_v45, %v2729_v46  ;;  %v752_v62 = vor.u32 %v751_v50, %v748_v48  ;;  %v761_v63 = vor.u32 %v760_v51, %v757_v29 }
  0xdf   : > { %v769_v3 = vor.u32 %v768_v53, %v765_v52  ;;  %v495_v1 = vrot.slane %v2728_v56, 5  ;;  %v497_v2 = vrot.slane %v493_v57, 5 }
  0xe0   : > { %1377 = vmatmul.bf16.vlgmr.msrb.gmra.mxu0 %v569_v59  ;;  %1406 = vmatmul.bf16.vlgmr.msrb.gmra.mxu1 %v586_v60  ;;  %v494_v59 = vpack.c.b16 %v490_v42, %v490_v42  ;;  %v744_v60 = vor.u32 %v743_v43, %v740_v47  ;;  %v496_v4 = vrot.slane %v2732_v58, 5 }
  0xe1   : > { %v770_v7 = vsel %vm246_vm13, %v761_v63, %v769_v3  ;;  %v498_v33 = vsel %vm346_vm5, %v495_v1, %v497_v2  ;;  %v830_v8 = vshrl.u32 %v495_v1, 16  ;;  %v833_v10 = vshll.u32 %v495_v1, 16 }
  0xe2   : > { %v499_v6 = vrot.slane %v494_v59, 5  ;;  %v753_v0 = vsel %vm246_vm13, %v744_v60, %v752_v62  ;;  %v847_v11 = vshrl.u32 %v496_v4, 16  ;;  %v850_v12 = vshll.u32 %v496_v4, 16 }
  0xe3   : > { %v838_v13 = vshrl.u32 %v498_v33, 16  ;;  %v841_v18 = vshll.u32 %v498_v33, 16  ;;  %v832_v15 = vrot.slane %v830_v8, 3  ;;  %v835_v54 = vrot.slane %v833_v10, 4 }
  0xe4   : > { %v500_v9 = vsel %vm346_vm5, %v496_v4, %v499_v6  ;;  %v849_v5 = vrot.slane %v847_v11, 3  ;;  %v852_v16 = vrot.slane %v850_v12, 4  ;;  %v3611_v6 = vld [vmem:[%s3931_s3] sm:$0xf] }
  0xe5   : > { %v855_v14 = vshrl.u32 %v500_v9, 16  ;;  %v858_v34 = vshll.u32 %v500_v9, 16  ;;  %v840_v17 = vrot.slane %v838_v13, 3  ;;  %v843_v19 = vrot.slane %v841_v18, 4 }
  0xe6   : > { %v836_v20 = vor.u32 %v835_v54, %v832_v15  ;;  %v853_v22 = vor.u32 %v852_v16, %v849_v5  ;;  %v1429_v8 = vperm.slane %v3611_v6, 0 }
  0xe7   : > { %v857_v37 = vrot.slane %v855_v14, 3  ;;  %v860_v38 = vrot.slane %v858_v34, 4  ;;  %v844_v21 = vor.u32 %v843_v19, %v840_v17  ;;  %v1430_v34 = vperm.slane %v3611_v6, 1 }
  0xe9   : > { %v861_v23 = vor.u32 %v860_v38, %v857_v37 }
  0xf0   : > { %1382 = vmatmul.bf16.gmra.mxu0 %v661_v24  ;;  %1411 = vmatmul.bf16.gmra.mxu1 %v678_v25  ;;  %v845_v24 = vsel %vm246_vm13, %v836_v20, %v844_v21  ;;  %v862_v25 = vsel %vm246_vm13, %v853_v22, %v861_v23 }
 0x100   : > { %1387 = vmatmul.bf16.gmra.mxu0 %v753_v0  ;;  %1416 = vmatmul.bf16.gmra.mxu1 %v770_v7 }
 0x110   : > { %1392 = vmatmul.bf16.gmra.mxu0 %v845_v24  ;;  %1421 = vmatmul.bf16.gmra.mxu1 %v862_v25 }
 0x11d   : > { %v1262_v26 = vpop.f32.mrf.mxu0  ;;  %v1291_v27 = vpop.f32.mrf.mxu1 }
 0x11e   : > { %v1292_v30 = vadd.f32 %v1291_v27, %v1262_v26 }
 0x125   : > { %v1264_v31 = vpop.f32.mrf.mxu0  ;;  %v1293_v32 = vpop.f32.mrf.mxu1 }
 0x126   : > { %v1294_v35 = vadd.f32 %v1293_v32, %v1264_v31 }
 0x129   : > { %v1320_v46 = vpop.f32.mrf.mxu2  ;;  %v1349_v43 = vpop.f32.mrf.mxu3 }
 0x12a   : > { %v1321_v59 = vadd.f32 %v1320_v46, %v1292_v30 }
 0x12c   : > { %v1350_v3 = vadd.f32 %v1349_v43, %v1321_v59 }
 0x12d   : > { %v1267_v36 = vpop.f32.mrf.mxu0  ;;  %v1296_v61 = vpop.f32.mrf.mxu1 }
 0x12e   : > { %v1297_v1 = vadd.f32 %v1296_v61, %v1267_v36 }
 0x131   : > { %v1322_v29 = vpop.f32.mrf.mxu2  ;;  %v1351_v53 = vpop.f32.mrf.mxu3 }
 0x132   : > { %v1323_v0 = vadd.f32 %v1322_v29, %v1294_v35 }
 0x134   : > { %v1352_v12 = vadd.f32 %v1351_v53, %v1323_v0  ;;  %v1432_v0 = vperm.slane %v3611_v6, 3 }
 0x135   : > { %v1269_v39 = vpop.f32.mrf.mxu0  ;;  %v1298_v40 = vpop.f32.mrf.mxu1 }
 0x136   : > { %v1299_v13 = vadd.f32 %v1298_v40, %v1269_v39 }
 0x139   : > { %v1325_v55 = vpop.f32.mrf.mxu2  ;;  %v1354_v58 = vpop.f32.mrf.mxu3 }
 0x13a   : > { %v1326_v2 = vadd.f32 %v1325_v55, %v1297_v1 }
 0x13c   : > { %v1355_v33 = vadd.f32 %v1354_v58, %v1326_v2 }
 0x13d   : > { %v1272_v28 = vpop.f32.mrf.mxu0  ;;  %v1301_v41 = vpop.f32.mrf.mxu1 }
 0x13e   : > { %v3596_v42 = vadd.f32 %v1301_v41, %v1272_v28  ;;  %v3188_v28 = vld [vmem:[%s3930_s2 + $0x38] sm:$0xff] }
 0x13f   : > { %v3196_v41 = vld [vmem:[%s3930_s2 + $0x78] sm:$0xff]  ;;  %2437 = vmatpush.bf16.msrb.mxu2 %v3188_v28  ;;  %v3190_v28 = vld [vmem:[%s3930_s2 + $0x48] sm:$0xff] }
 0x140   : > { %2466 = vmatpush.bf16.msrb.mxu3 %v3196_v41  ;;  %v3199_v41 = vld [vmem:[%s3930_s2 + $0x90] sm:$0xff] }
 0x141   : > { %v1327_v60 = vpop.f32.mrf.mxu2  ;;  %v1356_v7 = vpop.f32.mrf.mxu3 }
 0x142   : > { %v1328_v15 = vadd.f32 %v1327_v60, %v1299_v13 }
 0x144   : > { %v1357_v19 = vadd.f32 %v1356_v7, %v1328_v15 }
 0x145   : > { %v1274_v44 = vpop.f32.mrf.mxu0  ;;  %v1303_v45 = vpop.f32.mrf.mxu1 }
 0x146   : > { %v3598_v47 = vadd.f32 %v1303_v45, %v1274_v44 }
 0x149   : > { %v1330_v18 = vpop.f32.mrf.mxu2  ;;  %v1359_v37 = vpop.f32.mrf.mxu3 }
 0x14a   : > { %v1331_v44 = vadd.f32 %v1330_v18, %v3596_v42 }
 0x14c   : > { %v1360_v29 = vadd.f32 %v1359_v37, %v1331_v44  ;;  %v3212_v37 = vld [vmem:[%s3930_s2 + $0xf8] sm:$0xff]  ;;  %v3207_v44 = vld [vmem:[%s3930_s2 + $0xd0] sm:$0xff] }
 0x14d   : > { %v3600_v48 = vpop.f32.mrf.mxu0  ;;  %v3602_v50 = vpop.f32.mrf.mxu1  ;;  %2524 = vmatpush.bf16.msra.mxu1 %v3212_v37 }
 0x14e   : > { %v1307_v53 = vadd.f32 %v3602_v50, %v3600_v48 }
 0x151   : > { %v1332_v26 = vpop.f32.mrf.mxu2  ;;  %v1361_v40 = vpop.f32.mrf.mxu3 }
 0x152   : > { %v1333_v58 = vadd.f32 %v1332_v26, %v3598_v47  ;;  %v3210_v26 = vld [vmem:[%s3930_s2 + $0xe8] sm:$0xff] }
 0x154   : > { %v1362_v1 = vadd.f32 %v1361_v40, %v1333_v58  ;;  %v3182_v40 = vld [vmem:[%s3930_s2 + $0x8] sm:$0xff] }
 0x155   : > { %v3604_v51 = vpop.f32.mrf.mxu0  ;;  %v3606_v52 = vpop.f32.mrf.mxu1 }
 0x156   : > { %v1309_v2 = vadd.f32 %v3606_v52, %v3604_v51 }
 0x159   : > { %v1335_v45 = vpop.f32.mrf.mxu2 }
 0x15a   : > { %v1336_v55 = vadd.f32 %v1335_v45, %v1307_v53  ;;  %v3181_v45 = vld [vmem:[%s3930_s2] sm:$0xff] }
 0x15d   : > { %v1378_v56 = vpop.f32.mrf.mxu0  ;;  %v1407_v57 = vpop.f32.mrf.mxu1 }
 0x15e   : > { %v1379_v4 = vadd.f32 %v1378_v56, %v1350_v3 }
 0x160   : > { %v1408_v9 = vadd.f32 %v1407_v57, %v1379_v4  ;;  %v1364_v57 = vpop.f32.mrf.mxu3 }
 0x161   : > { %v1365_v59 = vadd.f32 %v1364_v57, %v1336_v55  ;;  %v1337_v60 = vpop.f32.mrf.mxu2  ;;  %v3205_v57 = vld [vmem:[%s3930_s2 + $0xc0] sm:$0xff] }
 0x162   : > { %v1437_v54 = vadd.f32 %v1429_v8, %v1408_v9  ;;  %v1338_v48 = vadd.f32 %v1337_v60, %v1309_v2  ;;  %v1491_v60 = vld [vmem:[#allocation2] sm:$0x88] }
 0x164   : > { %v1445_v38 = vmax.f32 %v1437_v54, 0.0 }
 0x165   : > { %v1380_v62 = vpop.f32.mrf.mxu0  ;;  %v1409_v63 = vpop.f32.mrf.mxu1 }
 0x166   : > { %v1381_v5 = vadd.f32 %v1380_v62, %v1352_v12 }
 0x168   : > { %v1410_v20 = vadd.f32 %v1409_v63, %v1381_v5  ;;  %v1431_v63 = vperm.slane %v3611_v6, 2  ;;  %v1366_v47 = vpop.f32.mrf.mxu3 }
 0x16a   : > { %v1441_v27 = vadd.f32 %v1429_v8, %v1410_v20  ;;  %v1367_v8 = vadd.f32 %v1366_v47, %v1338_v48  ;;  %v3194_v20 = vld [vmem:[%s3930_s2 + $0x68] sm:$0xff] }
 0x16c   : > { %v1449_v32 = vmax.f32 %v1441_v27, 0.0  ;;  %v3184_v27 = vld [vmem:[%s3930_s2 + $0x18] sm:$0xff] }
 0x16d   : > { %v1383_v10 = vpop.f32.mrf.mxu0  ;;  %v1412_v11 = vpop.f32.mrf.mxu1 }
 0x16e   : > { %v1384_v14 = vadd.f32 %v1383_v10, %v1355_v33 }
 0x170   : > { %v1413_v16 = vadd.f32 %v1412_v11, %v1384_v14 }
 0x172   : > { %v1438_v17 = vadd.f32 %v1430_v34, %v1413_v16  ;;  %v3187_v16 = vld [vmem:[%s3930_s2 + $0x30] sm:$0xff] }
 0x173   : > { %2438 = vmatpush.bf16.msrb.mxu2 %v3187_v16 }
 0x174   : > { %v1446_v21 = vmax.f32 %v1438_v17, 0.0  ;;  %v3195_v17 = vld [vmem:[%s3930_s2 + $0x70] sm:$0xff] }
 0x175   : > { %v1385_v22 = vpop.f32.mrf.mxu0  ;;  %v1414_v23 = vpop.f32.mrf.mxu1  ;;  %2467 = vmatpush.bf16.msrb.mxu3 %v3195_v17 }
 0x176   : > { %v1386_v24 = vadd.f32 %v1385_v22, %v1357_v19  ;;  %v1453_v25 = vpack.c.bf16 %v1446_v21, %v1445_v38  ;;  %v3204_v19 = vld [vmem:[%s3930_s2 + $0xb8] sm:$0xff]  ;;  %v3186_v38 = vld [vmem:[%s3930_s2 + $0x28] sm:$0xff]  ;;  %v3203_v21 = vld [vmem:[%s3930_s2 + $0xb0] sm:$0xff] }
 0x177   : > { %2495 = vmatpush.bf16.msra.mxu0 %v3204_v19  ;;  %2439 = vmatpush.bf16.msrb.mxu2 %v3186_v38  ;;  %v3211_v22 = vld [vmem:[%s3930_s2 + $0xf0] sm:$0xff] }
 0x178   : > { %v1415_v30 = vadd.f32 %v1414_v23, %v1386_v24  ;;  %1461 = vrot.lane.b32.xlu2 %v1453_v25, %s3252_s28  ;;  %v3185_v23 = vld [vmem:[%s3930_s2 + $0x20] sm:$0xff]  ;;  %2525 = vmatpush.bf16.msra.mxu1 %v3211_v22  ;;  %v3202_v25 = vld [vmem:[%s3930_s2 + $0xa8] sm:$0xff] }
 0x179   : > { %2468 = vmatpush.bf16.msrb.mxu3 %v3194_v20  ;;  %v3193_v24 = vld [vmem:[%s3930_s2 + $0x60] sm:$0xff] }
 0x17a   : > { %v1442_v31 = vadd.f32 %v1430_v34, %v1415_v30  ;;  %v3192_v30 = vld [vmem:[%s3930_s2 + $0x58] sm:$0xff] }
 0x17b   : > { %2496 = vmatpush.bf16.msra.mxu0 %v3203_v21  ;;  %2440 = vmatpush.bf16.msrb.mxu2 %v3185_v23 }
 0x17c   : > { %v1450_v35 = vmax.f32 %v1442_v31, 0.0  ;;  %2526 = vmatpush.bf16.msra.mxu1 %v3210_v26  ;;  %v3201_v31 = vld [vmem:[%s3930_s2 + $0xa0] sm:$0xff] }
 0x17d   : > { %v1388_v36 = vpop.f32.mrf.mxu0  ;;  %v1417_v61 = vpop.f32.mrf.mxu1  ;;  %2469 = vmatpush.bf16.msrb.mxu3 %v3193_v24 }
 0x17e   : > { %v1455_v39 = vpack.c.bf16 %v1450_v35, %v1449_v32  ;;  %v1389_v56 = vadd.f32 %v1388_v36, %v1360_v29  ;;  %v3209_v32 = vld [vmem:[%s3930_s2 + $0xe0] sm:$0xff]  ;;  %v3183_v35 = vld [vmem:[%s3930_s2 + $0x10] sm:$0xff]  ;;  %v3206_v29 = vld [vmem:[%s3930_s2 + $0xc8] sm:$0xff] }
 0x17f   : > { %2497 = vmatpush.bf16.msra.mxu0 %v3202_v25  ;;  %2441 = vmatpush.bf16.msrb.mxu2 %v3184_v27  ;;  %v3191_v36 = vld [vmem:[%s3930_s2 + $0x50] sm:$0xff] }
 0x180   : > { %1465 = vrot.lane.b32.xlu2 %v1455_v39, %s3252_s28  ;;  %v1418_v62 = vadd.f32 %v1417_v61, %v1389_v56  ;;  %2527 = vmatpush.bf16.msra.mxu1 %v3209_v32  ;;  %v3200_v61 = vld [vmem:[%s3930_s2 + $0x98] sm:$0xff]  ;;  %v3197_v56 = vld [vmem:[%s3930_s2 + $0x80] sm:$0xff] }
 0x181   : > { %2470 = vmatpush.bf16.msrb.mxu3 %v3192_v30  ;;  %v3208_v39 = vld [vmem:[%s3930_s2 + $0xd8] sm:$0xff] }
 0x182   : > { %v1439_v50 = vadd.f32 %v1431_v63, %v1418_v62 }
 0x183   : > { %2498 = vmatpush.bf16.msra.mxu0 %v3201_v31  ;;  %2442 = vmatpush.bf16.msrb.mxu2 %v3183_v35 }
 0x184   : > { %v1447_v10 = vmax.f32 %v1439_v50, 0.0  ;;  %2528 = vmatpush.bf16.msra.mxu1 %v3208_v39 }
 0x185   : > { %v1390_v46 = vpop.f32.mrf.mxu0  ;;  %v1419_v43 = vpop.f32.mrf.mxu1  ;;  %2471 = vmatpush.bf16.msrb.mxu3 %v3191_v36 }
 0x186   : > { %v1391_v7 = vadd.f32 %v1390_v46, %v1362_v1  ;;  %v3189_v46 = vld [vmem:[%s3930_s2 + $0x40] sm:$0xff]  ;;  %v1499_v1 = vunpack.c.h.b16 %v1491_v60 }
 0x187   : > { %2499 = vmatpush.bf16.msra.mxu0 %v3200_v61  ;;  %2443 = vmatpush.bf16.msrb.mxu2 %v3182_v40 }
 0x188   : > { %v1420_v11 = vadd.f32 %v1419_v43, %v1391_v7  ;;  %2529 = vmatpush.bf16.msra.mxu1 %v3207_v44  ;;  %v3198_v43 = vld [vmem:[%s3930_s2 + $0x88] sm:$0xff] }
 0x189   : > { %2472 = vmatpush.bf16.msrb.mxu3 %v3190_v28 }
 0x18a   : > { %v1443_v15 = vadd.f32 %v1431_v63, %v1420_v11 }
 0x18b   : > { %2500 = vmatpush.bf16.msra.mxu0 %v3199_v41  ;;  %2444 = vmatpush.bf16.msrb.mxu2 %v3181_v45 }
 0x18c   : > { %v1451_v52 = vmax.f32 %v1443_v15, 0.0  ;;  %2530 = vmatpush.bf16.msra.mxu1 %v3206_v29 }
 0x18d   : > { %v1393_v42 = vpop.f32.mrf.mxu0  ;;  %v1422_v3 = vpop.f32.mrf.mxu1  ;;  %2473 = vmatpush.bf16.msrb.mxu3 %v3189_v46 }
 0x18e   : > { %v1394_v4 = vadd.f32 %v1393_v42, %v1365_v59 }
 0x18f   : > { %2501 = vmatpush.bf16.msra.mxu0 %v3198_v43 }
 0x190   : > { %v1423_v33 = vadd.f32 %v1422_v3, %v1394_v4  ;;  %2531 = vmatpush.bf16.msra.mxu1 %v3205_v57  ;;  %v1498_v3 = vunpack.c.l.b16 %v1491_v60  ;;  %v3220_v57 = vld [vmem:[%s3930_s2 + $0x138] sm:$0xff]  ;;  %v3219_v60 = vld [vmem:[%s3930_s2 + $0x130] sm:$0xff] }
 0x191   : > { %2553 = vmatpush.bf16.msra.mxu2 %v3220_v57 }
 0x192   : > { %v1440_v9 = vadd.f32 %v1432_v0, %v1423_v33 }
 0x193   : > { %2502 = vmatpush.bf16.msra.mxu0 %v3197_v56 }
 0x194   : > { %v1448_v12 = vmax.f32 %v1440_v9, 0.0 }
 0x195   : > { %v1395_v13 = vpop.f32.mrf.mxu0  ;;  %v1424_v34 = vpop.f32.mrf.mxu1  ;;  %2554 = vmatpush.bf16.msra.mxu2 %v3219_v60 }
 0x196   : > { %v1396_v18 = vadd.f32 %v1395_v13, %v1367_v8  ;;  %v1454_v14 = vpack.c.bf16 %v1448_v12, %v1447_v10 }
 0x198   : > { %v1425_v54 = vadd.f32 %v1424_v34, %v1396_v18  ;;  %1463 = vrot.lane.b32.xlu0 %v1454_v14, %s3252_s28 }
 0x19a   : > { %v1444_v51 = vadd.f32 %v1432_v0, %v1425_v54 }
 0x19c   : > { %v1452_v6 = vmax.f32 %v1444_v51, 0.0 }
 0x19e   : > { %v1456_v5 = vpack.c.bf16 %v1452_v6, %v1451_v52 }
 0x1a0   : > { %1467 = vrot.lane.b32.xlu1 %v1456_v5, %s3252_s28  ;;  %s3903_s28 = scalar_lea.vmem %s3933_s5, %s3128_s26 }
 0x1d2   : > { %v3717_v53 = vpop.permute.xlu2 %1461 }
 0x1d3   : > { %v1469_v55 = vrot.slane %v3717_v53, 4 }
 0x1d5   : > { %v1473_v58 = vsel %vm284_vm10, %v1469_v55, %v3717_v53 }
 0x1d6   : > { %1485 = vst.msk [vmem:[#allocation2 + $0x14] sm:$0xff] %vm3426_vm12, %v1473_v58  ;;  %v3228_v58 = vld [vmem:[%s3930_s2 + $0x178] sm:$0xff] }
 0x1d7   : > { %2582 = vmatpush.bf16.msra.mxu3 %v3228_v58 }
 0x1da   : > { %v3732_v59 = vpop.permute.xlu2 %1465 }
 0x1db   : > { %v1471_v62 = vrot.slane %v3732_v59, 4 }
 0x1dd   : > { %v1476_v63 = vsel %vm284_vm10, %v1471_v62, %v3732_v59  ;;  %v1492_v42 = vld [vmem:[#allocation2 + $0x14] sm:$0xff] }
 0x1de   : > { %1488 = vst.msk [vmem:[#allocation2 + $0x28] sm:$0xff] %vm3426_vm12, %v1476_v63  ;;  %v1500_v2 = vunpack.c.l.b16 %v1492_v42  ;;  %v1501_v4 = vunpack.c.h.b16 %v1492_v42  ;;  %v3227_v63 = vld [vmem:[%s3930_s2 + $0x170] sm:$0xff]  ;;  %v3216_v59 = vld [vmem:[%s3930_s2 + $0x118] sm:$0xff] }
 0x1df   : > { %2583 = vmatpush.bf16.msra.mxu3 %v3227_v63 }
 0x1e0   : > { %v1504_v0 = vpack.c.b16 %v1500_v2, %v1498_v3  ;;  %v1505_v48 = vpack.c.b16 %v1501_v4, %v1499_v1  ;;  %v3218_v3 = vld [vmem:[%s3930_s2 + $0x128] sm:$0xff] }
 0x1e1   : > { %v3226_v1 = vld [vmem:[%s3930_s2 + $0x168] sm:$0xff]  ;;  %2555 = vmatpush.bf16.msra.mxu2 %v3218_v3 }
 0x1e2   : > { %v1686_v7 = vshrl.u32 %v1504_v0, 16  ;;  %v1689_v33 = vshll.u32 %v1504_v0, 16  ;;  %v1703_v9 = vshrl.u32 %v1505_v48, 16  ;;  %v1706_v47 = vshll.u32 %v1505_v48, 16  ;;  %v3217_v48 = vld [vmem:[%s3930_s2 + $0x120] sm:$0xff] }
 0x1e3   : > { %2584 = vmatpush.bf16.msra.mxu3 %v3226_v1 }
 0x1e4   : > { %v1688_v14 = vrot.slane %v1686_v7, 3  ;;  %v1691_v49 = vrot.slane %v1689_v33, 4  ;;  %v1705_v34 = vrot.slane %v1703_v9, 3  ;;  %v1708_v15 = vrot.slane %v1706_v47, 4  ;;  %v1537_v33 = vld [vmem:[#allocation2 + $0x4] sm:$0x88] }
 0x1e5   : > { %v1493_v50 = vld [vmem:[#allocation2 + $0x28] sm:$0xff]  ;;  %2556 = vmatpush.bf16.msra.mxu2 %v3217_v48  ;;  %v1544_v47 = vunpack.c.l.b16 %v1537_v33 }
 0x1e6   : > { %v1502_v8 = vunpack.c.l.b16 %v1493_v50  ;;  %v1503_v10 = vunpack.c.h.b16 %v1493_v50  ;;  %v1692_v26 = vor.u32 %v1691_v49, %v1688_v14  ;;  %v1709_v30 = vor.u32 %v1708_v15, %v1705_v34  ;;  %v3225_v50 = vld [vmem:[%s3930_s2 + $0x160] sm:$0xff] }
 0x1e7   : > { %2585 = vmatpush.bf16.msra.mxu3 %v3225_v50 }
 0x1e8   : > { %v1506_v11 = vpack.c.b16 %v1502_v8, %v1502_v8  ;;  %v3741_v12 = vpack.c.b16 %v1502_v8, %v1500_v2  ;;  %v1507_v13 = vpack.c.b16 %v1503_v10, %v1503_v10  ;;  %v3743_v18 = vpack.c.b16 %v1503_v10, %v1501_v4 }
 0x1e9   : > { %2557 = vmatpush.bf16.msra.mxu2 %v3216_v59  ;;  %v3222_v59 = vld [vmem:[%s3930_s2 + $0x148] sm:$0xff] }
 0x1ea   : > { %v1694_v54 = vshrl.u32 %v1506_v11, 16  ;;  %v1697_v51 = vshll.u32 %v1506_v11, 16  ;;  %v1711_v52 = vshrl.u32 %v1507_v13, 16  ;;  %v1714_v6 = vshll.u32 %v1507_v13, 16 }
 0x1eb   : > { %v1511_v5 = vshrl.u32 %v3741_v12, 16  ;;  %v1514_v16 = vshll.u32 %v3741_v12, 16  ;;  %v1519_v17 = vshrl.u32 %v3743_v18, 16  ;;  %v1522_v19 = vshll.u32 %v3743_v18, 16 }
 0x1ec   : > { %v1696_v37 = vrot.slane %v1694_v54, 3  ;;  %v1699_v38 = vrot.slane %v1697_v51, 4  ;;  %v1713_v20 = vrot.slane %v1711_v52, 3  ;;  %v1716_v21 = vrot.slane %v1714_v6, 4 }
 0x1ed   : > { %v1513_v22 = vrot.slane %v1511_v5, 4  ;;  %v1516_v23 = vrot.slane %v1514_v16, 5  ;;  %v1521_v24 = vrot.slane %v1519_v17, 4  ;;  %v1524_v25 = vrot.slane %v1522_v19, 5 }
 0x1ee   : > { %v1700_v27 = vor.u32 %v1699_v38, %v1696_v37  ;;  %v1717_v31 = vor.u32 %v1716_v21, %v1713_v20  ;;  %v1545_v11 = vunpack.c.h.b16 %v1537_v33 }
 0x1ef   : > { %v1517_v32 = vor.u32 %v1516_v23, %v1513_v22  ;;  %v1525_v35 = vor.u32 %v1524_v25, %v1521_v24 }
 0x1f0   : > { %v1701_v36 = vsel %vm246_vm13, %v1692_v26, %v1700_v27  ;;  %v1718_v61 = vsel %vm246_vm13, %v1709_v30, %v1717_v31  ;;  %v3215_v31 = vld [vmem:[%s3930_s2 + $0x110] sm:$0xff] }
 0x1f1   : > { %2445 = vmatmul.bf16.vlgmr.msrb.gmra.mxu2 %v1701_v36  ;;  %2474 = vmatmul.bf16.vlgmr.msrb.gmra.mxu3 %v1718_v61  ;;  %v1720_v39 = vshrl.u32 %v1517_v32, 16  ;;  %v1723_v40 = vshll.u32 %v1517_v32, 16  ;;  %v1729_v28 = vshrl.u32 %v1525_v35, 16  ;;  %v1732_v41 = vshll.u32 %v1525_v35, 16  ;;  %v3223_v32 = vld [vmem:[%s3930_s2 + $0x150] sm:$0xff] }
 0x1f2   : > { %2558 = vmatpush.bf16.msra.mxu2 %v3215_v31 }
 0x1f3   : > { %v1722_v44 = vrot.slane %v1720_v39, 3  ;;  %v1725_v45 = vrot.slane %v1723_v40, 4  ;;  %v1731_v46 = vrot.slane %v1729_v28, 3  ;;  %v1734_v43 = vrot.slane %v1732_v41, 4 }
 0x1f5   : > { %v1726_v29 = vor.u32 %v1725_v45, %v1722_v44  ;;  %v1735_v56 = vor.u32 %v1734_v43, %v1731_v46 }
 0x1f7   : > { %2503 = vmatmul.bf16.vlgmr.msra.gmra.mxu0 %v1726_v29  ;;  %2532 = vmatmul.bf16.vlgmr.msra.gmra.mxu1 %v1735_v56 }
 0x20a   : > { %v1464_v42 = vpop.permute.xlu0 %1463 }
 0x20b   : > { %v1470_v2 = vrot.slane %v1464_v42, 4 }
 0x20d   : > { %v1474_v4 = vsel %vm286_vm11, %v1469_v55, %v1470_v2  ;;  %1487 = vst.msk [vmem:[#allocation2 + $0x24] sm:$0xf] %vm258_vm0, %v1470_v2  ;;  %v3783_v55 = vld [vmem:[#allocation2 + $0x8] sm:$0x88] }
 0x20e   : > { %v3774_v0 = vsel %vm284_vm10, %v1474_v4, %v1464_v42  ;;  %v1590_v49 = vunpack.c.l.b16 %v3783_v55  ;;  %v1591_v27 = vunpack.c.h.b16 %v3783_v55 }
 0x20f   : > { %1486 = vst [vmem:[#allocation2 + $0x1c] sm:$0xff] %v3774_v0  ;;  %v1592_v34 = vunpack.c.l.b16 %v3774_v0  ;;  %v1593_v30 = vunpack.c.h.b16 %v3774_v0 }
 0x211   : > { %v3798_v5 = vpack.c.b16 %v1592_v34, %v1590_v49 }
 0x212   : > { %v1468_v7 = vpop.permute.xlu1 %1467 }
 0x213   : > { %v1472_v53 = vrot.slane %v1468_v7, 4  ;;  %v1870_v24 = vshrl.u32 %v3798_v5, 16 }
 0x215   : > { %v1477_v9 = vsel %vm286_vm11, %v1471_v62, %v1472_v53  ;;  %1490 = vst.msk [vmem:[#allocation2 + $0x38] sm:$0xf] %vm258_vm0, %v1472_v53  ;;  %v3224_v62 = vld [vmem:[%s3930_s2 + $0x158] sm:$0xff] }
 0x216   : > { %v1478_v8 = vsel %vm284_vm10, %v1477_v9, %v1468_v7  ;;  %v1538_v10 = vld [vmem:[#allocation2 + $0x18] sm:$0xff]  ;;  %2586 = vmatpush.bf16.msra.mxu3 %v3224_v62 }
 0x217   : > { %1489 = vst [vmem:[#allocation2 + $0x30] sm:$0xff] %v1478_v8  ;;  %v1546_v13 = vunpack.c.l.b16 %v1538_v10  ;;  %v1547_v14 = vunpack.c.h.b16 %v1538_v10  ;;  %v1594_v15 = vunpack.c.l.b16 %v1478_v8  ;;  %v1595_v17 = vunpack.c.h.b16 %v1478_v8 }
 0x219   : > { %v1550_v54 = vpack.c.b16 %v1546_v13, %v1544_v47  ;;  %v1551_v51 = vpack.c.b16 %v1547_v14, %v1545_v11  ;;  %v3800_v16 = vpack.c.b16 %v1594_v15, %v1594_v15  ;;  %v3817_v44 = vpack.c.b16 %v1595_v17, %v1595_v17 }
 0x21a   : > { %2587 = vmatpush.bf16.msra.mxu3 %v3223_v32  ;;  %v3823_v53 = vpack.c.b16 %v1594_v15, %v1592_v34  ;;  %v1597_v47 = vpack.c.b16 %v1593_v30, %v1591_v27  ;;  %v3825_v8 = vpack.c.b16 %v1595_v17, %v1593_v30  ;;  %v3214_v15 = vld [vmem:[%s3930_s2 + $0x108] sm:$0xff] }
 0x21b   : > { %v1778_v52 = vshrl.u32 %v1550_v54, 16  ;;  %v1781_v6 = vshll.u32 %v1550_v54, 16  ;;  %v1795_v20 = vshrl.u32 %v1551_v51, 16  ;;  %v1798_v21 = vshll.u32 %v1551_v51, 16  ;;  %2559 = vmatpush.bf16.msra.mxu2 %v3214_v15  ;;  %v1494_v15 = vld [vmem:[#allocation2 + $0x3c] sm:$0x11] }
 0x21c   : > { %v1878_v25 = vshrl.u32 %v3800_v16, 16  ;;  %v1881_v26 = vshll.u32 %v3800_v16, 16  ;;  %v1898_v62 = vshll.u32 %v3817_v44, 16  ;;  %v1611_v17 = vshrl.u32 %v3825_v8, 16 }
 0x21d   : > { %v1780_v37 = vrot.slane %v1778_v52, 3  ;;  %v1783_v38 = vrot.slane %v1781_v6, 4  ;;  %v1797_v28 = vrot.slane %v1795_v20, 3  ;;  %v1800_v41 = vrot.slane %v1798_v21, 4 }
 0x21e   : > { %v1539_v19 = vld [vmem:[#allocation2 + $0x2c] sm:$0xff]  ;;  %v1606_v6 = vshll.u32 %v3823_v53, 16  ;;  %2588 = vmatpush.bf16.msra.mxu3 %v3222_v59  ;;  %v1873_v21 = vshll.u32 %v3798_v5, 16  ;;  %v1614_v27 = vshll.u32 %v3825_v8, 16  ;;  %v1887_v32 = vshrl.u32 %v1597_v47, 16 }
 0x21f   : > { %v1548_v22 = vunpack.c.l.b16 %v1539_v19  ;;  %v1549_v23 = vunpack.c.h.b16 %v1539_v19  ;;  %v1784_v40 = vor.u32 %v1783_v38, %v1780_v37  ;;  %v1801_v7 = vor.u32 %v1800_v41, %v1797_v28  ;;  %v1631_v41 = vld [vmem:[#allocation2 + $0x34] sm:$0xff] }
 0x220   : > { %v1616_v28 = vrot.slane %v1614_v27, 5  ;;  %v1875_v16 = vrot.slane %v1873_v21, 4  ;;  %v1528_v21 = vunpack.c.h.b16 %v1494_v15 }
 0x221   : > { %v1552_v35 = vpack.c.b16 %v1548_v22, %v1548_v22  ;;  %v1553_v36 = vpack.c.b16 %v1549_v23, %v1549_v23  ;;  %v3813_v61 = vpack.c.b16 %v1548_v22, %v1546_v13  ;;  %v3815_v39 = vpack.c.b16 %v1549_v23, %v1547_v14 }
 0x222   : > { %v1895_v13 = vshrl.u32 %v3817_v44, 16  ;;  %v1603_v14 = vshrl.u32 %v3823_v53, 16  ;;  %v1608_v22 = vrot.slane %v1606_v6, 5  ;;  %v1613_v23 = vrot.slane %v1611_v17, 4 }
 0x223   : > { %v1786_v45 = vshrl.u32 %v1552_v35, 16  ;;  %v1789_v46 = vshll.u32 %v1552_v35, 16  ;;  %v1803_v43 = vshrl.u32 %v1553_v36, 16  ;;  %v1806_v29 = vshll.u32 %v1553_v36, 16 }
 0x224   : > { %v1557_v56 = vshrl.u32 %v3813_v61, 16  ;;  %v1560_v57 = vshll.u32 %v3813_v61, 16  ;;  %v1565_v58 = vshrl.u32 %v3815_v39, 16  ;;  %v1568_v60 = vshll.u32 %v3815_v39, 16 }
 0x225   : > { %v1788_v63 = vrot.slane %v1786_v45, 3  ;;  %v1791_v42 = vrot.slane %v1789_v46, 4  ;;  %v1805_v3 = vrot.slane %v1803_v43, 3  ;;  %v1808_v1 = vrot.slane %v1806_v29, 4  ;;  %v3213_v43 = vld [vmem:[%s3930_s2 + $0x100] sm:$0xff] }
 0x226   : > { %v1559_v2 = vrot.slane %v1557_v56, 4  ;;  %v1562_v4 = vrot.slane %v1560_v57, 5  ;;  %v1567_v0 = vrot.slane %v1565_v58, 4  ;;  %v1570_v48 = vrot.slane %v1568_v60, 5  ;;  %v3221_v29 = vld [vmem:[%s3930_s2 + $0x140] sm:$0xff]  ;;  %2560 = vmatpush.bf16.msra.mxu2 %v3213_v43 }
 0x227   : > { %v1792_v50 = vor.u32 %v1791_v42, %v1788_v63  ;;  %v1809_v33 = vor.u32 %v1808_v1, %v1805_v3  ;;  %v1605_v52 = vrot.slane %v1603_v14, 4  ;;  %v1890_v35 = vshll.u32 %v1597_v47, 16  ;;  %v1630_v56 = vld [vmem:[#allocation2 + $0x20] sm:$0xff]  ;;  %2589 = vmatpush.bf16.msra.mxu3 %v3221_v29 }
 0x228   : > { %v1563_v55 = vor.u32 %v1562_v4, %v1559_v2  ;;  %v1571_v9 = vor.u32 %v1570_v48, %v1567_v0  ;;  %v1880_v36 = vrot.slane %v1878_v25, 3  ;;  %v1897_v44 = vrot.slane %v1895_v13, 3  ;;  %v1629_v2 = vld [vmem:[#allocation2 + $0xc] sm:$0x88] }
 0x229   : > { %v1793_v10 = vsel %vm246_vm13, %v1784_v40, %v1792_v50  ;;  %v1810_v11 = vsel %vm246_vm13, %v1801_v7, %v1809_v33  ;;  %v1883_v40 = vrot.slane %v1881_v26, 4  ;;  %v1900_v45 = vrot.slane %v1898_v62, 4 }
 0x22a   : > { %2450 = vmatmul.bf16.gmra.mxu2 %v1793_v10  ;;  %2479 = vmatmul.bf16.gmra.mxu3 %v1810_v11  ;;  %v1812_v49 = vshrl.u32 %v1563_v55, 16  ;;  %v1815_v54 = vshll.u32 %v1563_v55, 16  ;;  %v1821_v51 = vshrl.u32 %v1571_v9, 16  ;;  %v1824_v34 = vshll.u32 %v1571_v9, 16 }
 0x22b   : > { %v1609_v46 = vor.u32 %v1608_v22, %v1605_v52  ;;  %v1872_v25 = vrot.slane %v1870_v24, 3  ;;  %v1617_v26 = vor.u32 %v1616_v28, %v1613_v23  ;;  %v1889_v57 = vrot.slane %v1887_v32, 3 }
 0x22c   : > { %v1814_v19 = vrot.slane %v1812_v49, 3  ;;  %v1817_v37 = vrot.slane %v1815_v54, 4  ;;  %v1823_v38 = vrot.slane %v1821_v51, 3  ;;  %v1826_v20 = vrot.slane %v1824_v34, 4 }
 0x22d   : > { %v1892_v58 = vrot.slane %v1890_v35, 4  ;;  %v1642_v60 = vunpack.c.l.b16 %v1631_v41  ;;  %v1884_v63 = vor.u32 %v1883_v40, %v1880_v36  ;;  %v1901_v42 = vor.u32 %v1900_v45, %v1897_v44 }
 0x22e   : > { %v1818_v30 = vor.u32 %v1817_v37, %v1814_v19  ;;  %v1827_v31 = vor.u32 %v1826_v20, %v1823_v38  ;;  %v1904_v3 = vshrl.u32 %v1609_v46, 16  ;;  %v1907_v1 = vshll.u32 %v1609_v46, 16 }
 0x22f   : > { %v1640_v4 = vunpack.c.l.b16 %v1630_v56  ;;  %v1876_v0 = vor.u32 %v1875_v16, %v1872_v25  ;;  %v1913_v48 = vshrl.u32 %v1617_v26, 16  ;;  %v1916_v50 = vshll.u32 %v1617_v26, 16 }
 0x230   : > { %2508 = vmatmul.bf16.gmra.mxu0 %v1818_v30  ;;  %2537 = vmatmul.bf16.gmra.mxu1 %v1827_v31  ;;  %v1643_v7 = vunpack.c.h.b16 %v1631_v41  ;;  %v1893_v5 = vor.u32 %v1892_v58, %v1889_v57  ;;  %v1638_v55 = vunpack.c.l.b16 %v1629_v2  ;;  %v1639_v9 = vunpack.c.h.b16 %v1629_v2 }
 0x231   : > { %v1648_v24 = vpack.c.b16 %v1642_v60, %v1640_v4  ;;  %v1885_v33 = vsel %vm246_vm13, %v1876_v0, %v1884_v63  ;;  %v1641_v47 = vunpack.c.h.b16 %v1630_v56  ;;  %v1906_v11 = vrot.slane %v1904_v3, 3 }
 0x232   : > { %v1902_v10 = vsel %vm246_vm13, %v1893_v5, %v1901_v42  ;;  %v1909_v13 = vrot.slane %v1907_v1, 4  ;;  %v1646_v14 = vpack.c.b16 %v1642_v60, %v1642_v60  ;;  %v1915_v49 = vrot.slane %v1913_v48, 3 }
 0x233   : > { %v1918_v54 = vrot.slane %v1916_v50, 4  ;;  %v1647_v51 = vpack.c.b16 %v1643_v7, %v1643_v7  ;;  %v1649_v34 = vpack.c.b16 %v1643_v7, %v1641_v47  ;;  %v1651_v59 = vshrl.u32 %v1648_v24, 16 }
 0x234   : > { %v1654_v62 = vshll.u32 %v1648_v24, 16  ;;  %v1644_v52 = vpack.c.b16 %v1640_v4, %v1638_v55  ;;  %v1645_v6 = vpack.c.b16 %v1641_v47, %v1639_v9  ;;  %v1970_v37 = vshrl.u32 %v1646_v14, 16 }
 0x235   : > { %v1659_v17 = vshrl.u32 %v1649_v34, 16  ;;  %v1662_v19 = vshll.u32 %v1649_v34, 16  ;;  %v1973_v38 = vshll.u32 %v1646_v14, 16  ;;  %v1527_v20 = vunpack.c.l.b16 %v1494_v15  ;;  %v1540_v14 = vld [vmem:[#allocation2 + $0x40] sm:$0x11] }
 0x236   : > { %v1910_v22 = vor.u32 %v1909_v13, %v1906_v11  ;;  %v1919_v23 = vor.u32 %v1918_v54, %v1915_v49  ;;  %v1987_v27 = vshrl.u32 %v1647_v51, 16  ;;  %v1990_v30 = vshll.u32 %v1647_v51, 16 }
 0x237   : > { %v1653_v31 = vrot.slane %v1651_v59, 4  ;;  %v1656_v32 = vrot.slane %v1654_v62, 5  ;;  %v1661_v35 = vrot.slane %v1659_v17, 4  ;;  %v1664_v36 = vrot.slane %v1662_v19, 5 }
 0x238   : > { %v1962_v40 = vshrl.u32 %v1644_v52, 16  ;;  %v1965_v28 = vshll.u32 %v1644_v52, 16  ;;  %v1979_v41 = vshrl.u32 %v1645_v6, 16  ;;  %v1982_v44 = vshll.u32 %v1645_v6, 16 }
 0x239   : > { %v1529_v45 = vpack.c.b16 %v1527_v20, %v1527_v20  ;;  %v1530_v46 = vpack.c.b16 %v1528_v21, %v1528_v21  ;;  %v1972_v43 = vrot.slane %v1970_v37, 3  ;;  %v1975_v29 = vrot.slane %v1973_v38, 4 }
 0x23a   : > { %2455 = vmatmul.bf16.gmra.mxu2 %v1885_v33  ;;  %2484 = vmatmul.bf16.gmra.mxu3 %v1902_v10  ;;  %v1989_v25 = vrot.slane %v1987_v27, 3  ;;  %v1992_v16 = vrot.slane %v1990_v30, 4  ;;  %v1657_v26 = vor.u32 %v1656_v32, %v1653_v31  ;;  %v1665_v56 = vor.u32 %v1664_v36, %v1661_v35 }
 0x23b   : > { %v1964_v57 = vrot.slane %v1962_v40, 3  ;;  %v1967_v58 = vrot.slane %v1965_v28, 4  ;;  %v1981_v60 = vrot.slane %v1979_v41, 3  ;;  %v1984_v63 = vrot.slane %v1982_v44, 4 }
 0x23c   : > { %v1531_v42 = vrot.slane %v3741_v12, 5  ;;  %v1533_v3 = vrot.slane %v1529_v45, 5  ;;  %v1976_v1 = vor.u32 %v1975_v29, %v1972_v43  ;;  %v1993_v2 = vor.u32 %v1992_v16, %v1989_v25 }
 0x23d   : > { %v1532_v4 = vrot.slane %v3743_v18, 5  ;;  %v1535_v0 = vrot.slane %v1530_v46, 5  ;;  %v1996_v48 = vshrl.u32 %v1657_v26, 16  ;;  %v1999_v50 = vshll.u32 %v1657_v26, 16  ;;  %v1586_v26 = vld [vmem:[#allocation2 + $0x44] sm:$0x11] }
 0x23e   : > { %v2005_v7 = vshrl.u32 %v1665_v56, 16  ;;  %v2008_v5 = vshll.u32 %v1665_v56, 16  ;;  %v1968_v24 = vor.u32 %v1967_v58, %v1964_v57  ;;  %v1985_v33 = vor.u32 %v1984_v63, %v1981_v60 }
 0x23f   : > { %v1534_v47 = vsel %vm346_vm5, %v1531_v42, %v1533_v3  ;;  %v1536_v12 = vsel %vm346_vm5, %v1532_v4, %v1535_v0  ;;  %v1998_v10 = vrot.slane %v1996_v48, 3  ;;  %v2001_v11 = vrot.slane %v1999_v50, 4 }
 0x240   : > { %2513 = vmatmul.bf16.gmra.mxu0 %v1910_v22  ;;  %2542 = vmatmul.bf16.gmra.mxu1 %v1919_v23  ;;  %v1977_v55 = vsel %vm246_vm13, %v1968_v24, %v1976_v1  ;;  %v1994_v9 = vsel %vm246_vm13, %v1985_v33, %v1993_v2  ;;  %v2007_v18 = vrot.slane %v2005_v7, 3  ;;  %v2010_v13 = vrot.slane %v2008_v5, 4 }
 0x241   : > { %v1738_v49 = vshrl.u32 %v1531_v42, 16  ;;  %v1741_v54 = vshll.u32 %v1531_v42, 16  ;;  %v1746_v51 = vshrl.u32 %v1534_v47, 16  ;;  %v1749_v34 = vshll.u32 %v1534_v47, 16 }
 0x242   : > { %v1755_v15 = vshrl.u32 %v1532_v4, 16  ;;  %v1758_v59 = vshll.u32 %v1532_v4, 16  ;;  %v1763_v62 = vshrl.u32 %v1536_v12, 16  ;;  %v1766_v52 = vshll.u32 %v1536_v12, 16 }
 0x243   : > { %v1573_v6 = vunpack.c.l.b16 %v1540_v14  ;;  %v2002_v17 = vor.u32 %v2001_v11, %v1998_v10  ;;  %v2011_v19 = vor.u32 %v2010_v13, %v2007_v18  ;;  %v1574_v37 = vunpack.c.h.b16 %v1540_v14 }
 0x244   : > { %v1740_v38 = vrot.slane %v1738_v49, 3  ;;  %v1743_v20 = vrot.slane %v1741_v54, 4  ;;  %v1748_v21 = vrot.slane %v1746_v51, 3  ;;  %v1751_v22 = vrot.slane %v1749_v34, 4 }
 0x245   : > { %v1757_v23 = vrot.slane %v1755_v15, 3  ;;  %v1760_v27 = vrot.slane %v1758_v59, 4  ;;  %v1765_v30 = vrot.slane %v1763_v62, 3  ;;  %v1768_v31 = vrot.slane %v1766_v52, 4  ;;  %v1634_v59 = vld [vmem:[#allocation2 + $0x48] sm:$0x11] }
 0x246   : > { %v1575_v32 = vpack.c.b16 %v1573_v6, %v1573_v6  ;;  %v1576_v35 = vpack.c.b16 %v1574_v37, %v1574_v37  ;;  %v1744_v36 = vor.u32 %v1743_v20, %v1740_v38  ;;  %v1752_v40 = vor.u32 %v1751_v22, %v1748_v21  ;;  %v3180_v21 = vld [vmem:[#allocation2 + $0x30] sm:$0xf0]  ;;  %v2929_v22 = vld [vmem:[#allocation2 + $0x34] sm:$0xf0] }
 0x247   : > { %v1761_v28 = vor.u32 %v1760_v27, %v1757_v23  ;;  %v1769_v41 = vor.u32 %v1768_v31, %v1765_v30  ;;  %v1577_v44 = vrot.slane %v3813_v61, 5  ;;  %v1578_v46 = vrot.slane %v3815_v39, 5 }
 0x248   : > { %v1579_v45 = vrot.slane %v1575_v32, 5  ;;  %v1581_v43 = vrot.slane %v1576_v35, 5  ;;  %v1753_v29 = vsel %vm246_vm13, %v1744_v36, %v1752_v40  ;;  %v1619_v61 = vunpack.c.l.b16 %v1586_v26  ;;  %v3179_v32 = vld [vmem:[#allocation2 + $0x24] sm:$0xf] }
 0x249   : > { %v1770_v25 = vsel %vm246_vm13, %v1761_v28, %v1769_v41  ;;  %v1830_v57 = vshrl.u32 %v1577_v44, 16  ;;  %v1833_v58 = vshll.u32 %v1577_v44, 16  ;;  %v1847_v42 = vshrl.u32 %v1578_v46, 16  ;;  %v2927_v41 = vld [vmem:[#allocation2 + $0x20] sm:$0xf] }
 0x24a   : > { %2460 = vmatmul.bf16.gmra.mxu2 %v1977_v55  ;;  %2489 = vmatmul.bf16.gmra.mxu3 %v1994_v9  ;;  %v1580_v16 = vsel %vm346_vm5, %v1577_v44, %v1579_v45  ;;  %v1582_v56 = vsel %vm346_vm5, %v1578_v46, %v1581_v43  ;;  %v1850_v3 = vshll.u32 %v1578_v46, 16  ;;  %v1620_v2 = vunpack.c.h.b16 %v1586_v26 }
 0x24b   : > { %v1838_v60 = vshrl.u32 %v1580_v16, 16  ;;  %v1841_v63 = vshll.u32 %v1580_v16, 16  ;;  %v1855_v39 = vshrl.u32 %v1582_v56, 16  ;;  %v1858_v1 = vshll.u32 %v1582_v56, 16 }
 0x24c   : > { %v1832_v4 = vrot.slane %v1830_v57, 3  ;;  %v1835_v0 = vrot.slane %v1833_v58, 4  ;;  %v1621_v7 = vpack.c.b16 %v1619_v61, %v1619_v61  ;;  %v1849_v5 = vrot.slane %v1847_v42, 3 }
 0x24d   : > { %v1840_v48 = vrot.slane %v1838_v60, 3  ;;  %v1843_v50 = vrot.slane %v1841_v63, 4  ;;  %v1852_v24 = vrot.slane %v1850_v3, 4  ;;  %v1857_v33 = vrot.slane %v1855_v39, 3 }
 0x24e   : > { %v1860_v55 = vrot.slane %v1858_v1, 4  ;;  %v1622_v9 = vpack.c.b16 %v1620_v2, %v1620_v2  ;;  %v1836_v47 = vor.u32 %v1835_v0, %v1832_v4  ;;  %v1623_v18 = vrot.slane %v3823_v53, 5 }
 0x24f   : > { %v1844_v12 = vor.u32 %v1843_v50, %v1840_v48  ;;  %v1853_v10 = vor.u32 %v1852_v24, %v1849_v5  ;;  %v1625_v13 = vrot.slane %v1621_v7, 5  ;;  %v1624_v14 = vrot.slane %v3825_v8, 5 }
 0x250   : > { %2518 = vmatmul.bf16.gmra.mxu0 %v2002_v17  ;;  %2547 = vmatmul.bf16.gmra.mxu1 %v2011_v19  ;;  %v1861_v11 = vor.u32 %v1860_v55, %v1857_v33  ;;  %v1627_v49 = vrot.slane %v1622_v9, 5  ;;  %v1922_v62 = vshrl.u32 %v1623_v18, 16  ;;  %v1925_v52 = vshll.u32 %v1623_v18, 16 }
 0x251   : > { %v1845_v54 = vsel %vm246_vm13, %v1836_v47, %v1844_v12  ;;  %v1626_v34 = vsel %vm346_vm5, %v1623_v18, %v1625_v13  ;;  %v1939_v17 = vshrl.u32 %v1624_v14, 16  ;;  %v1942_v19 = vshll.u32 %v1624_v14, 16 }
 0x252   : > { %v1862_v51 = vsel %vm246_vm13, %v1853_v10, %v1861_v11  ;;  %v1628_v15 = vsel %vm346_vm5, %v1624_v14, %v1627_v49  ;;  %v1930_v6 = vshrl.u32 %v1626_v34, 16  ;;  %v1933_v53 = vshll.u32 %v1626_v34, 16 }
 0x253   : > { %v1947_v37 = vshrl.u32 %v1628_v15, 16  ;;  %v1950_v8 = vshll.u32 %v1628_v15, 16  ;;  %v1673_v38 = vunpack.c.l.b16 %v1634_v59  ;;  %v1674_v20 = vunpack.c.h.b16 %v1634_v59 }
 0x254   : > { %v1924_v23 = vrot.slane %v1922_v62, 3  ;;  %v1927_v27 = vrot.slane %v1925_v52, 4  ;;  %v1932_v30 = vrot.slane %v1930_v6, 3  ;;  %v1941_v31 = vrot.slane %v1939_v17, 3 }
 0x255   : > { %v1935_v35 = vrot.slane %v1933_v53, 4  ;;  %v1944_v36 = vrot.slane %v1942_v19, 4  ;;  %v1949_v40 = vrot.slane %v1947_v37, 3  ;;  %v1952_v28 = vrot.slane %v1950_v8, 4 }
 0x256   : > { %v2928_v44 = vor.u32 %v3180_v21, %v2927_v41  ;;  %v1677_v45 = vpack.c.b16 %v1673_v38, %v1673_v38  ;;  %v2932_v46 = vor.u32 %v3179_v32, %v2929_v22  ;;  %v1678_v43 = vpack.c.b16 %v1674_v20, %v1674_v20 }
 0x257   : > { %v1945_v16 = vor.u32 %v1944_v36, %v1941_v31  ;;  %v1953_v26 = vor.u32 %v1952_v28, %v1949_v40  ;;  %v3895_v36 = vld [vmem:[%s3932_s4] sm:$0xf] }
 0x258   : > { %v1679_v56 = vrot.slane %v2928_v44, 5  ;;  %v1681_v57 = vrot.slane %v1677_v45, 5  ;;  %v1680_v58 = vrot.slane %v2932_v46, 5  ;;  %v1683_v60 = vrot.slane %v1678_v43, 5 }
 0x259   : > { %v1954_v61 = vsel %vm246_vm13, %v1945_v16, %v1953_v26  ;;  %v2613_v43 = vperm.slane %v3895_v36, 0 }
 0x25a   : > { %2561 = vmatmul.bf16.vlgmr.msra.gmra.mxu2 %v1753_v29  ;;  %2590 = vmatmul.bf16.vlgmr.msra.gmra.mxu3 %v1770_v25  ;;  %v1928_v29 = vor.u32 %v1927_v27, %v1924_v23  ;;  %v1936_v25 = vor.u32 %v1935_v35, %v1932_v30  ;;  %v1682_v42 = vsel %vm346_vm5, %v1679_v56, %v1681_v57  ;;  %v2014_v39 = vshrl.u32 %v1679_v56, 16 }
 0x25b   : > { %v1684_v3 = vsel %vm346_vm5, %v1680_v58, %v1683_v60  ;;  %v2017_v1 = vshll.u32 %v1679_v56, 16  ;;  %v2031_v2 = vshrl.u32 %v1680_v58, 16  ;;  %v2034_v4 = vshll.u32 %v1680_v58, 16 }
 0x25c   : > { %v1937_v63 = vsel %vm246_vm13, %v1928_v29, %v1936_v25  ;;  %v2022_v0 = vshrl.u32 %v1682_v42, 16  ;;  %v2025_v48 = vshll.u32 %v1682_v42, 16  ;;  %v2039_v50 = vshrl.u32 %v1684_v3, 16  ;;  %v3239_v29 = vld [vmem:[%s3307_s27] sm:$0xff] }
 0x25d   : > { %v2042_v7 = vshll.u32 %v1684_v3, 16  ;;  %v2016_v5 = vrot.slane %v2014_v39, 3  ;;  %v2019_v24 = vrot.slane %v2017_v1, 4  ;;  %v2033_v33 = vrot.slane %v2031_v2, 3  ;;  %v3240_v2 = vld [vmem:[%s3307_s27 + $0x10] sm:$0xff] }
 0x25e   : > { %v2036_v55 = vrot.slane %v2034_v4, 4  ;;  %v2024_v9 = vrot.slane %v2022_v0, 3  ;;  %v2027_v47 = vrot.slane %v2025_v48, 4  ;;  %v2041_v12 = vrot.slane %v2039_v50, 3 }
 0x25f   : > { %v2044_v10 = vrot.slane %v2042_v7, 4  ;;  %v2020_v11 = vor.u32 %v2019_v24, %v2016_v5  ;;  %v2629_v25 = vunpack.c.l.bf16 %v3239_v29  ;;  %v2633_v4 = vunpack.c.l.bf16 %v3240_v2 }
 0x260   : > { %v2028_v18 = vor.u32 %v2027_v47, %v2024_v9  ;;  %v2037_v13 = vor.u32 %v2036_v55, %v2033_v33 }
 0x261   : > { %v2045_v14 = vor.u32 %v2044_v10, %v2041_v12  ;;  %v2614_v10 = vperm.slane %v3895_v36, 1 }
 0x262   : > { %v2029_v49 = vsel %vm246_vm13, %v2020_v11, %v2028_v18  ;;  %v2630_v11 = vunpack.c.h.bf16 %v3239_v29 }
 0x26a   : > { %2566 = vmatmul.bf16.gmra.mxu2 %v1845_v54  ;;  %2595 = vmatmul.bf16.gmra.mxu3 %v1862_v51  ;;  %v2046_v54 = vsel %vm246_vm13, %v2037_v13, %v2045_v14 }
 0x274   : > { %v2446_v51 = vpop.f32.mrf.mxu2  ;;  %v2475_v34 = vpop.f32.mrf.mxu3 }
 0x275   : > { %v2504_v38 = vpop.f32.mrf.mxu0  ;;  %v2533_v22 = vpop.f32.mrf.mxu1  ;;  %v2476_v23 = vadd.f32 %v2475_v34, %v2446_v51 }
 0x277   : > { %v2505_v32 = vadd.f32 %v2504_v38, %v2476_v23 }
 0x279   : > { %v2534_v41 = vadd.f32 %v2533_v22, %v2505_v32 }
 0x27a   : > { %2571 = vmatmul.bf16.gmra.mxu2 %v1937_v63  ;;  %2600 = vmatmul.bf16.gmra.mxu3 %v1954_v61 }
 0x27c   : > { %v2448_v15 = vpop.f32.mrf.mxu2  ;;  %v2477_v59 = vpop.f32.mrf.mxu3 }
 0x27d   : > { %v2506_v27 = vpop.f32.mrf.mxu0  ;;  %v2535_v35 = vpop.f32.mrf.mxu1  ;;  %v2478_v40 = vadd.f32 %v2477_v59, %v2448_v15 }
 0x27f   : > { %v2507_v16 = vadd.f32 %v2506_v27, %v2478_v40 }
 0x281   : > { %v2536_v63 = vadd.f32 %v2535_v35, %v2507_v16 }
 0x28a   : > { %2576 = vmatmul.bf16.gmra.mxu2 %v2029_v49  ;;  %2605 = vmatmul.bf16.gmra.mxu3 %v2046_v54 }
 0x2ad   : > { %v2451_v62 = vpop.f32.mrf.mxu2  ;;  %v2480_v52 = vpop.f32.mrf.mxu3 }
 0x2ae   : > { %v2509_v28 = vpop.f32.mrf.mxu0  ;;  %v2538_v26 = vpop.f32.mrf.mxu1  ;;  %v2481_v58 = vadd.f32 %v2480_v52, %v2451_v62 }
 0x2b0   : > { %v2510_v0 = vadd.f32 %v2509_v28, %v2481_v58 }
 0x2b2   : > { %v2539_v33 = vadd.f32 %v2538_v26, %v2510_v0 }
 0x2b5   : > { %v2453_v6 = vpop.f32.mrf.mxu2  ;;  %v2482_v17 = vpop.f32.mrf.mxu3 }
 0x2b6   : > { %v2511_v3 = vpop.f32.mrf.mxu0  ;;  %v2540_v50 = vpop.f32.mrf.mxu1  ;;  %v2483_v5 = vadd.f32 %v2482_v17, %v2453_v6  ;;  %v2634_v17 = vunpack.c.h.bf16 %v3240_v2 }
 0x2b8   : > { %v2512_v18 = vadd.f32 %v2511_v3, %v2483_v5  ;;  %v2616_v5 = vperm.slane %v3895_v36, 3 }
 0x2ba   : > { %v2541_v15 = vadd.f32 %v2540_v50, %v2512_v18 }
 0x2bd   : > { %v2456_v53 = vpop.f32.mrf.mxu2  ;;  %v2485_v19 = vpop.f32.mrf.mxu3 }
 0x2be   : > { %v2514_v13 = vpop.f32.mrf.mxu0  ;;  %v2543_v54 = vpop.f32.mrf.mxu1  ;;  %v2486_v51 = vadd.f32 %v2485_v19, %v2456_v53 }
 0x2c0   : > { %v2515_v38 = vadd.f32 %v2514_v13, %v2486_v51 }
 0x2c2   : > { %v2544_v40 = vadd.f32 %v2543_v54, %v2515_v38 }
 0x2c5   : > { %v3880_v37 = vpop.f32.mrf.mxu2  ;;  %v3882_v8 = vpop.f32.mrf.mxu3 }
 0x2c6   : > { %v2516_v23 = vpop.f32.mrf.mxu0  ;;  %v2488_v32 = vadd.f32 %v3882_v8, %v3880_v37 }
 0x2c8   : > { %v2517_v29 = vadd.f32 %v2516_v23, %v2488_v32 }
 0x2cd   : > { %v3884_v20 = vpop.f32.mrf.mxu2  ;;  %v3886_v21 = vpop.f32.mrf.mxu3 }
 0x2ce   : > { %v2519_v26 = vpop.f32.mrf.mxu0  ;;  %v2491_v37 = vadd.f32 %v3886_v21, %v3884_v20 }
 0x2d0   : > { %v2520_v3 = vadd.f32 %v2519_v26, %v2491_v37 }
 0x2d5   : > { %v3888_v30 = vpop.f32.mrf.mxu2  ;;  %v3890_v31 = vpop.f32.mrf.mxu3 }
 0x2dd   : > { %v2562_v44 = vpop.f32.mrf.mxu2  ;;  %v2591_v45 = vpop.f32.mrf.mxu3 }
 0x2de   : > { %v2563_v46 = vadd.f32 %v2562_v44, %v2534_v41  ;;  %v2615_v44 = vperm.slane %v3895_v36, 2 }
 0x2e0   : > { %v2592_v56 = vadd.f32 %v2591_v45, %v2563_v46  ;;  %v2545_v45 = vpop.f32.mrf.mxu1  ;;  %v3241_v46 = vld [vmem:[%s3307_s27 + $0x8] sm:$0xff] }
 0x2e2   : > { %v2621_v57 = vadd.f32 %v2613_v43, %v2592_v56  ;;  %v2546_v56 = vadd.f32 %v2545_v45, %v2517_v29 }
 0x2e4   : > { %v2637_v60 = vadd.f32 %v2629_v25, %v2621_v57 }
 0x2e5   : > { %v2564_v61 = vpop.f32.mrf.mxu2  ;;  %v2593_v42 = vpop.f32.mrf.mxu3 }
 0x2e6   : > { %v2645_v39 = vmax.f32 %v2637_v60, 0.0  ;;  %v2565_v1 = vadd.f32 %v2564_v61, %v2536_v63  ;;  %v3242_v61 = vld [vmem:[%s3307_s27 + $0x18] sm:$0xff] }
 0x2e8   : > { %2653 = vst [vmem:[%s3903_s28] sm:$0xff] %v2645_v39  ;;  %v2594_v48 = vadd.f32 %v2593_v42, %v2565_v1  ;;  %v2635_v42 = vunpack.c.l.bf16 %v3242_v61  ;;  %v2548_v1 = vpop.f32.mrf.mxu1 }
 0x2ea   : > { %v2625_v7 = vadd.f32 %v2613_v43, %v2594_v48  ;;  %v2631_v43 = vunpack.c.l.bf16 %v3241_v46  ;;  %v2549_v48 = vadd.f32 %v2548_v1, %v2520_v3 }
 0x2ec   : > { %v2641_v24 = vadd.f32 %v2633_v4, %v2625_v7  ;;  %v2493_v4 = vadd.f32 %v3890_v31, %v3888_v30 }
 0x2ed   : > { %v2567_v55 = vpop.f32.mrf.mxu2  ;;  %v2596_v9 = vpop.f32.mrf.mxu3 }
 0x2ee   : > { %v2649_v47 = vmax.f32 %v2641_v24, 0.0  ;;  %v2568_v12 = vadd.f32 %v2567_v55, %v2539_v33  ;;  %v2521_v24 = vpop.f32.mrf.mxu0  ;;  %v2632_v33 = vunpack.c.h.bf16 %v3241_v46 }
 0x2ef   : > { %v2522_v55 = vadd.f32 %v2521_v24, %v2493_v4 }
 0x2f0   : > { %2657 = vst [vmem:[%s3903_s28 + $0x20] sm:$0xff] %v2649_v47  ;;  %v2597_v14 = vadd.f32 %v2596_v9, %v2568_v12  ;;  %v2550_v12 = vpop.f32.mrf.mxu1 }
 0x2f2   : > { %v2622_v49 = vadd.f32 %v2614_v10, %v2597_v14  ;;  %v2636_v14 = vunpack.c.h.bf16 %v3242_v61 }
 0x2f4   : > { %v2638_v34 = vadd.f32 %v2630_v11, %v2622_v49  ;;  %v2551_v11 = vadd.f32 %v2550_v12, %v2522_v55 }
 0x2f5   : > { %v2569_v59 = vpop.f32.mrf.mxu2  ;;  %v2598_v62 = vpop.f32.mrf.mxu3 }
 0x2f6   : > { %v2646_v52 = vmax.f32 %v2638_v34, 0.0  ;;  %v2570_v6 = vadd.f32 %v2569_v59, %v2541_v15 }
 0x2f8   : > { %2654 = vst [vmem:[%s3903_s28 + $0x8] sm:$0xff] %v2646_v52  ;;  %v2599_v22 = vadd.f32 %v2598_v62, %v2570_v6 }
 0x2fa   : > { %v2626_v27 = vadd.f32 %v2614_v10, %v2599_v22 }
 0x2fc   : > { %v2642_v35 = vadd.f32 %v2634_v17, %v2626_v27 }
 0x2fd   : > { %v2572_v53 = vpop.f32.mrf.mxu2  ;;  %v2601_v19 = vpop.f32.mrf.mxu3 }
 0x2fe   : > { %v2650_v28 = vmax.f32 %v2642_v35, 0.0  ;;  %v2573_v41 = vadd.f32 %v2572_v53, %v2544_v40 }
 0x300   : > { %2658 = vst [vmem:[%s3903_s28 + $0x28] sm:$0xff] %v2650_v28  ;;  %v2602_v25 = vadd.f32 %v2601_v19, %v2573_v41 }
 0x302   : > { %v2623_v16 = vadd.f32 %v2615_v44, %v2602_v25 }
 0x304   : > { %v2639_v8 = vadd.f32 %v2631_v43, %v2623_v16 }
 0x305   : > { %v2574_v57 = vpop.f32.mrf.mxu2  ;;  %v2603_v58 = vpop.f32.mrf.mxu3 }
 0x306   : > { %v2647_v60 = vmax.f32 %v2639_v8, 0.0  ;;  %v2575_v63 = vadd.f32 %v2574_v57, %v2546_v56 }
 0x308   : > { %2655 = vst [vmem:[%s3903_s28 + $0x10] sm:$0xff] %v2647_v60  ;;  %v2604_v39 = vadd.f32 %v2603_v58, %v2575_v63 }
 0x30a   : > { %v2627_v2 = vadd.f32 %v2615_v44, %v2604_v39 }
 0x30c   : > { %v2643_v0 = vadd.f32 %v2635_v42, %v2627_v2 }
 0x30d   : > { %v2577_v20 = vpop.f32.mrf.mxu2  ;;  %v2606_v21 = vpop.f32.mrf.mxu3 }
 0x30e   : > { %v2651_v50 = vmax.f32 %v2643_v0, 0.0  ;;  %v2578_v7 = vadd.f32 %v2577_v20, %v2549_v48 }
 0x310   : > { %2659 = vst [vmem:[%s3903_s28 + $0x30] sm:$0xff] %v2651_v50  ;;  %v2607_v9 = vadd.f32 %v2606_v21, %v2578_v7 }
 0x312   : > { %v2624_v47 = vadd.f32 %v2616_v5, %v2607_v9 }
 0x314   : > { %v2640_v10 = vadd.f32 %v2632_v33, %v2624_v47 }
 0x315   : > { %v2579_v30 = vpop.f32.mrf.mxu2  ;;  %v2608_v13 = vpop.f32.mrf.mxu3 }
 0x316   : > { %v2648_v31 = vmax.f32 %v2640_v10, 0.0  ;;  %v2580_v18 = vadd.f32 %v2579_v30, %v2551_v11 }
 0x318   : > { %2656 = vst [vmem:[%s3903_s28 + $0x18] sm:$0xff] %v2648_v31  ;;  %v2609_v49 = vadd.f32 %v2608_v13, %v2580_v18 }
 0x31a   : > { %v2628_v54 = vadd.f32 %v2616_v5, %v2609_v49 }
 0x31c   : > { %v2644_v51 = vadd.f32 %v2636_v14, %v2628_v54 }
 0x31e   : > { %v2652_v36 = vmax.f32 %v2644_v51, 0.0 }
 0x320   : > { %2660 = vst [vmem:[%s3903_s28 + $0x38] sm:$0xff] %v2652_v36 }
 0x321 PF: > { %s15_s18 = sadd.s32 1, %s3249_s18  }
 0x322   : > { %p12_p4 = scmp.ge.s32.totalorder %s15_s18, 4  }
 0x324   :  { %14 = sbr.rel (!%p12_p4) target bundleno = 1 (0x1), region = 70 }

</bundles_post_ra>
